<compile_context>
chip_gen: v5e
topology: v5e:2x2
jax: 0.10.0
libtpu: 0.0.40
codegen_flags: <defaults>
</compile_context>

<pallas_src>
import math
import functools

import jax
import jax.numpy as jnp
from jax.experimental import pallas as pl
from jax.experimental.pallas import tpu as pltpu


def _spc_kernel(x_ref, w_ref, o_ref, *, t, P, M, tile_n):
    # x_ref: (tile_n, t*P)   frames concatenated along the lane axis
    # w_ref: (t, P, M)       weights, already clamped to [0, 1] wrapper-side
    # o_ref: (tile_n, t*M)   final output tile, already in m*t+j column order
    ys = []
    for j in range(t):  # static unroll; t is small and known at trace time
        xj = x_ref[:, j * P:(j + 1) * P]                        # (tile_n, P)
        ys.append(jnp.dot(xj, w_ref[j],
                          preferred_element_type=jnp.float32))  # (tile_n, M)
    y = jnp.concatenate(ys, axis=-1)                            # col j*M + m
    y = jnp.clip(y, 0.0, 1.0)
    # Fold the m*t+j reorder into the kernel: lane permutation in VMEM (XLU work
    # hidden under the output DMA) instead of a second HBM pass in the wrapper.
    y = y.reshape(tile_n, t, M)
    y = jnp.transpose(y, (0, 2, 1))                             # (tile_n, M, t)
    o_ref[...] = y.reshape(tile_n, t * M).astype(o_ref.dtype)


def _ceil_to(x, m):
    return -(-x // m) * m


def _pick_batch_tile(n, t, P, M, max_tile_n=1024, vmem_budget_bytes=40 << 20):
    """Largest multiple-of-8 batch tile that fits the VMEM budget.

    Budgets for double-buffered x/out blocks, the resident (lane-padded) weight,
    and ~4x the out-tile of in-kernel f32 temporaries.  When N >= 16 the tile is
    capped at ~N/2 so the 'parallel' grid has >= 2 steps (keeps both v7x cores fed).
    """
    xp_row = _ceil_to(t * P, 128) * 4           # x-tile bytes per batch row
    op_row = _ceil_to(t * M, 128) * 4           # out-tile bytes per batch row
    per_row = 2 * xp_row + 2 * op_row + 4 * op_row
    w_bytes = 2 * t * _ceil_to(P, 8) * _ceil_to(M, 128) * 4
    budget = max(vmem_budget_bytes - w_bytes, 1 << 20)
    cap = min(max_tile_n, budget // per_row)
    if n >= 16:
        cap = min(cap, _ceil_to(n, 2) // 2)     # >= 2 grid steps for v7x megacore
    cap = min(cap, _ceil_to(n, 8))
    return max(8, (cap // 8) * 8)


def single_pixel_camera(x, weight, s, t, max_tile_n=1024):
    """x: (N, 1, t, s, s) f32, weight: (M, t, s, s) f32 -> (N, s*s) f32."""
    N = x.shape[0]
    P = s * s
    M = P // t

    # Metadata-only reshape (contiguous): no HBM relayout pass over x.
    xf = x.reshape(N, t * P)
    # Weight relayout + clamp hoisted out of the kernel (tiny, one fused XLA op).
    wf = jnp.clip(jnp.transpose(weight.reshape(M, t, P), (1, 2, 0)), 0.0, 1.0)

    tile_n = _pick_batch_tile(N, t, P, M, max_tile_n=max_tile_n)
    grid = (pl.cdiv(N, tile_n),)   # ragged last block handled by bounded DMAs

    kern = functools.partial(_spc_kernel, t=t, P=P, M=M, tile_n=tile_n)
    out = pl.pallas_call(
        kern,
        out_shape=jax.ShapeDtypeStruct((N, t * M), x.dtype),
        grid=grid,
        in_specs=[
            pl.BlockSpec((tile_n, t * P), lambda i: (i, 0)),
            pl.BlockSpec((t, P, M), lambda i: (0, 0, 0)),
        ],
        out_specs=pl.BlockSpec((tile_n, t * M), lambda i: (i, 0)),
        compiler_params=pltpu.CompilerParams(
            dimension_semantics=("parallel",),
            vmem_limit_bytes=48 << 20),
    )(xf, wf)

    # Output is already in m*t+j order: no post-pallas epilogue pass.
    return out


def reference(x, weight):
    # Pure-JAX reference mirroring the torch forward exactly.
    N, _, t, s, _ = x.shape
    M = weight.shape[0]
    xr = jnp.broadcast_to(x, (N, M, t, s, s))
    wc = jnp.clip(weight, 0.0, 1.0)
    y = jnp.sum(xr * wc[None], axis=(3, 4))            # (N, M, t)
    return jnp.clip(y.reshape(N, M * t), 0.0, 1.0)


if __name__ == "__main__":
    # Small shapes consistent with the module: s=16, t=4 -> M=64, P=256.
    s, t = 16, 4
    M = (s * s) // t

    key = jax.random.PRNGKey(0)
    kw, kx1, kx2 = jax.random.split(key, 3)

    # Deterministic init mirroring weight.data.normal_(0.5, sqrt(2/s^4)).
    std = math.sqrt(2.0 / s ** 4)
    weight = 0.5 + std * jax.random.normal(kw, (M, t, s, s), dtype=jnp.float32)

    # Case 1: tiny batch -> single (partial) block, grid=(1,).
    N1 = 2
    x1 = jax.random.uniform(kx1, (N1, 1, t, s, s), dtype=jnp.float32)
    out1 = jax.block_until_ready(single_pixel_camera(x1, weight, s, t))
    ref1 = reference(x1, weight)
    assert out1.shape == (N1, s * s)
    assert jnp.allclose(out1, ref1, atol=1e-5, rtol=1e-5), "mismatch (N=2)"

    # Case 2: multi-step "parallel" grid with a ragged last block (grid=(3,)).
    N2 = 20
    x2 = jax.random.uniform(kx2, (N2, 1, t, s, s), dtype=jnp.float32)
    out2 = jax.block_until_ready(single_pixel_camera(x2, weight, s, t))
    ref2 = reference(x2, weight)
    assert out2.shape == (N2, s * s)
    assert jnp.allclose(out2, ref2, atol=1e-5, rtol=1e-5), "mismatch (N=20)"

    print("KERNEL_OK")
</pallas_src>

<mosaic_0001>
module attributes {stable_mosaic.version = 11 : i64} {
  func.func @_spc_kernel(%arg0: i32, %arg1: memref<8x1024xf32, #tpu.memory_space<vmem>>, %arg2: memref<4x256x64xf32, #tpu.memory_space<vmem>>, %arg3: memref<8x256xf32, #tpu.memory_space<vmem>>) attributes {dimension_semantics = [#tpu.dimension_semantics<parallel>], iteration_bounds = array<i64: 1>, scalar_prefetch = 0 : i64, scratch_operands = 0 : i64, tpu.core_type = #tpu.core_type<tc>, window_params = [{transform_indices = @transform_0, window_bounds = array<i64: 8, 1024>}, {pipeline_mode = #tpu.pipeline_mode<synchronous>, transform_indices = @transform_1, window_bounds = array<i64: 4, 256, 64>}, {transform_indices = @transform_2, window_bounds = array<i64: 8, 256>}]} {
    %c0 = arith.constant 0 : index
    %c0_0 = arith.constant 0 : index
    %0 = vector.load %arg1[%c0, %c0_0] : memref<8x1024xf32, #tpu.memory_space<vmem>>, vector<8x256xf32>
    %c0_1 = arith.constant 0 : index
    %c0_2 = arith.constant 0 : index
    %c0_3 = arith.constant 0 : index
    %1 = vector.load %arg2[%c0_1, %c0_2, %c0_3] : memref<4x256x64xf32, #tpu.memory_space<vmem>>, vector<1x256x64xf32>
    %2 = vector.shape_cast %1 : vector<1x256x64xf32> to vector<256x64xf32>
    %cst = arith.constant dense<0.000000e+00> : vector<8x64xf32>
    %3 = tpu.matmul %0, %2, %cst {dimension_numbers = #tpu.dot_dimension_numbers<[1], [0], [0], [1], [0, 0, 1, 1], [], []>} : vector<8x256xf32>, vector<256x64xf32>, vector<8x64xf32> -> vector<8x64xf32>
    %c0_4 = arith.constant 0 : index
    %c256 = arith.constant 256 : index
    %4 = vector.load %arg1[%c0_4, %c256] : memref<8x1024xf32, #tpu.memory_space<vmem>>, vector<8x256xf32>
    %c1 = arith.constant 1 : index
    %c0_5 = arith.constant 0 : index
    %c0_6 = arith.constant 0 : index
    %5 = vector.load %arg2[%c1, %c0_5, %c0_6] : memref<4x256x64xf32, #tpu.memory_space<vmem>>, vector<1x256x64xf32>
    %6 = vector.shape_cast %5 : vector<1x256x64xf32> to vector<256x64xf32>
    %cst_7 = arith.constant dense<0.000000e+00> : vector<8x64xf32>
    %7 = tpu.matmul %4, %6, %cst_7 {dimension_numbers = #tpu.dot_dimension_numbers<[1], [0], [0], [1], [0, 0, 1, 1], [], []>} : vector<8x256xf32>, vector<256x64xf32>, vector<8x64xf32> -> vector<8x64xf32>
    %c0_8 = arith.constant 0 : index
    %c512 = arith.constant 512 : index
    %8 = vector.load %arg1[%c0_8, %c512] : memref<8x1024xf32, #tpu.memory_space<vmem>>, vector<8x256xf32>
    %c2 = arith.constant 2 : index
    %c0_9 = arith.constant 0 : index
    %c0_10 = arith.constant 0 : index
    %9 = vector.load %arg2[%c2, %c0_9, %c0_10] : memref<4x256x64xf32, #tpu.memory_space<vmem>>, vector<1x256x64xf32>
    %10 = vector.shape_cast %9 : vector<1x256x64xf32> to vector<256x64xf32>
    %cst_11 = arith.constant dense<0.000000e+00> : vector<8x64xf32>
    %11 = tpu.matmul %8, %10, %cst_11 {dimension_numbers = #tpu.dot_dimension_numbers<[1], [0], [0], [1], [0, 0, 1, 1], [], []>} : vector<8x256xf32>, vector<256x64xf32>, vector<8x64xf32> -> vector<8x64xf32>
    %c0_12 = arith.constant 0 : index
    %c768 = arith.constant 768 : index
    %12 = vector.load %arg1[%c0_12, %c768] : memref<8x1024xf32, #tpu.memory_space<vmem>>, vector<8x256xf32>
    %c3 = arith.constant 3 : index
    %c0_13 = arith.constant 0 : index
    %c0_14 = arith.constant 0 : index
    %13 = vector.load %arg2[%c3, %c0_13, %c0_14] : memref<4x256x64xf32, #tpu.memory_space<vmem>>, vector<1x256x64xf32>
    %14 = vector.shape_cast %13 : vector<1x256x64xf32> to vector<256x64xf32>
    %cst_15 = arith.constant dense<0.000000e+00> : vector<8x64xf32>
    %15 = tpu.matmul %12, %14, %cst_15 {dimension_numbers = #tpu.dot_dimension_numbers<[1], [0], [0], [1], [0, 0, 1, 1], [], []>} : vector<8x256xf32>, vector<256x64xf32>, vector<8x64xf32> -> vector<8x64xf32>
    %16 = tpu.concatenate %3, %7, %11, %15 in 1 : vector<8x64xf32>, vector<8x64xf32>, vector<8x64xf32>, vector<8x64xf32> -> vector<8x256xf32>
    %cst_16 = arith.constant 0.000000e+00 : f32
    %cst_17 = arith.constant 1.000000e+00 : f32
    %17 = vector.broadcast %cst_16 : f32 to vector<8x256xf32>
    %18 = arith.maximumf %17, %16 : vector<8x256xf32>
    %19 = vector.broadcast %cst_17 : f32 to vector<8x256xf32>
    %20 = arith.minimumf %19, %18 : vector<8x256xf32>
    %21 = vector.shape_cast %20 : vector<8x256xf32> to vector<8x4x64xf32>
    %22 = tpu.transpose %21, [0, 2, 1] : vector<8x4x64xf32> -> vector<8x64x4xf32>
    %23 = vector.shape_cast %22 : vector<8x64x4xf32> to vector<8x256xf32>
    %c0_18 = arith.constant 0 : index
    %c0_19 = arith.constant 0 : index
    %24 = vector.load %arg3[%c0_18, %c0_19] : memref<8x256xf32, #tpu.memory_space<vmem>>, vector<8x256xf32>
    tpu.vector_store %arg3[%c0_18, %c0_19], %23 {strides = array<i32>} : memref<8x256xf32, #tpu.memory_space<vmem>>, vector<8x256xf32>,
    return
  }
  func.func @transform_0(%arg0: i32) -> (i32, i32) {
    %c0_i32 = arith.constant 0 : i32
    %c0_i32_0 = arith.constant 0 : i32
    return %arg0, %c0_i32 : i32, i32
  }
  func.func @transform_1(%arg0: i32) -> (i32, i32, i32) {
    %c0_i32 = arith.constant 0 : i32
    %c0_i32_0 = arith.constant 0 : i32
    %c0_i32_1 = arith.constant 0 : i32
    %c0_i32_2 = arith.constant 0 : i32
    return %c0_i32, %c0_i32_0, %c0_i32_1 : i32, i32, i32
  }
  func.func @transform_2(%arg0: i32) -> (i32, i32) {
    %c0_i32 = arith.constant 0 : i32
    %c0_i32_0 = arith.constant 0 : i32
    return %arg0, %c0_i32 : i32, i32
  }
}

</mosaic_0001>

<bundles_post_ra>
// kernel: tpu_custom_call.1
= control target key start
LH: loop header
LB: loop body
LE: loop exit
PB: predicated region body
PF: predicated region fallthrough
CT: control target
= control target key end

     0   :  { %s3921_s0 = inlined_call_operand.vmem [shape: f32[2,1024], index: 0, kind: input, shape index: {}]   ;;  %s3922_s1 = inlined_call_operand.vmem [shape: f32[4,256,64], index: 1, kind: input, shape index: {}]   ;;  %s3923_s2 = inlined_call_operand.hbm [shape: f32[2,256], index: 2, kind: output, shape index: {}]  }
   0x1   :  { %v2006_v0 = vld [vmem:[%s3922_s1 + $0x178] sm:$0xff]  ;;  %v2005_v2 = vld [vmem:[%s3922_s1 + $0x170] sm:$0xff]  ;;  %v2004_v4 = vld [vmem:[%s3922_s1 + $0x168] sm:$0xff] }
   0x2   :  { %v2022_v1 = vld [vmem:[%s3922_s1 + $0x1f8] sm:$0xff]  ;;  %155 = vmatpush.msra.mxu2 %v2006_v0  ;;  %v2021_v3 = vld [vmem:[%s3922_s1 + $0x1f0] sm:$0xff]  ;;  %v2020_v5 = vld [vmem:[%s3922_s1 + $0x1e8] sm:$0xff] }
   0x3   :  { %175 = vmatpush.msra.mxu3 %v2022_v1  ;;  %v2003_v6 = vld [vmem:[%s3922_s1 + $0x160] sm:$0xff]  ;;  %v2002_v8 = vld [vmem:[%s3922_s1 + $0x158] sm:$0xff]  ;;  %v2001_v10 = vld [vmem:[%s3922_s1 + $0x150] sm:$0xff] }
   0x4   :  { %156 = vmatpush.msra.mxu2 %v2005_v2  ;;  %v2019_v7 = vld [vmem:[%s3922_s1 + $0x1e0] sm:$0xff]  ;;  %v2018_v9 = vld [vmem:[%s3922_s1 + $0x1d8] sm:$0xff]  ;;  %v2017_v11 = vld [vmem:[%s3922_s1 + $0x1d0] sm:$0xff] }
   0x5   :  { %176 = vmatpush.msra.mxu3 %v2021_v3  ;;  %v2000_v12 = vld [vmem:[%s3922_s1 + $0x148] sm:$0xff]  ;;  %v1999_v14 = vld [vmem:[%s3922_s1 + $0x140] sm:$0xff]  ;;  %v1998_v16 = vld [vmem:[%s3922_s1 + $0x138] sm:$0xff] }
   0x6   :  { %157 = vmatpush.msra.mxu2 %v2004_v4  ;;  %v2016_v13 = vld [vmem:[%s3922_s1 + $0x1c8] sm:$0xff]  ;;  %v2015_v15 = vld [vmem:[%s3922_s1 + $0x1c0] sm:$0xff]  ;;  %v2014_v17 = vld [vmem:[%s3922_s1 + $0x1b8] sm:$0xff] }
   0x7   :  { %177 = vmatpush.msra.mxu3 %v2020_v5  ;;  %v1997_v18 = vld [vmem:[%s3922_s1 + $0x130] sm:$0xff]  ;;  %v12_v20 = vld [vmem:[%s3921_s0] sm:$0xf]  ;;  %v1996_v22 = vld [vmem:[%s3922_s1 + $0x128] sm:$0xff] }
   0x8   :  { %158 = vmatpush.msra.mxu2 %v2003_v6  ;;  %v2013_v19 = vld [vmem:[%s3922_s1 + $0x1b0] sm:$0xff]  ;;  %v2012_v23 = vld [vmem:[%s3922_s1 + $0x1a8] sm:$0xff]  ;;  %v14_v24 = vld [vmem:[%s3921_s0 + $0x20] sm:$0xf]  ;;  %52 = vst [vmem:[#allocation1] ss:$4 sm:$0xff] %v12_v20 }
   0x9   :  { %178 = vmatpush.msra.mxu3 %v2019_v7  ;;  %v13_v21 = vld [vmem:[%s3921_s0 + $0x10] sm:$0xf]  ;;  %v1995_v26 = vld [vmem:[%s3922_s1 + $0x120] sm:$0xff]  ;;  %56 = vst [vmem:[#allocation1 + $0x2] ss:$4 sm:$0xff] %v14_v24  ;;  %v1994_v28 = vld [vmem:[%s3922_s1 + $0x118] sm:$0xff] }
   0xa   :  { %159 = vmatpush.msra.mxu2 %v2002_v8  ;;  %v15_v25 = vld [vmem:[%s3921_s0 + $0x30] sm:$0xf]  ;;  %v2011_v27 = vld [vmem:[%s3922_s1 + $0x1a0] sm:$0xff]  ;;  %54 = vst [vmem:[#allocation1 + $0x1] ss:$4 sm:$0xff] %v13_v21  ;;  %v2010_v29 = vld [vmem:[%s3922_s1 + $0x198] sm:$0xff] }
   0xb   :  { %179 = vmatpush.msra.mxu3 %v2018_v9  ;;  %58 = vst [vmem:[#allocation1 + $0x3] ss:$4 sm:$0xff] %v15_v25  ;;  %v1993_v30 = vld [vmem:[%s3922_s1 + $0x110] sm:$0xff]  ;;  %v1992_v32 = vld [vmem:[%s3922_s1 + $0x108] sm:$0xff]  ;;  %v1991_v34 = vld [vmem:[%s3922_s1 + $0x100] sm:$0xff] }
   0xc   :  { %160 = vmatpush.msra.mxu2 %v2001_v10  ;;  %v2009_v31 = vld [vmem:[%s3922_s1 + $0x190] sm:$0xff]  ;;  %v2008_v33 = vld [vmem:[%s3922_s1 + $0x188] sm:$0xff]  ;;  %v2007_v35 = vld [vmem:[%s3922_s1 + $0x180] sm:$0xff] }
   0xd   :  { %180 = vmatpush.msra.mxu3 %v2017_v11  ;;  %v2070_v36 = vld [vmem:[%s3922_s1 + $0x378] sm:$0xff]  ;;  %v103_v37 = vld [vmem:[%s3921_s0 + $0x4] sm:$0xf] }
   0xe   :  { %161 = vmatpush.msra.mxu2 %v2000_v12 }
   0xf   :  { %181 = vmatpush.msra.mxu3 %v2016_v13 }
  0x10   :  { %162 = vmatpush.msra.mxu2 %v1999_v14 }
  0x11   :  { %182 = vmatpush.msra.mxu3 %v2015_v15 }
  0x12   :  { %163 = vmatpush.msra.mxu2 %v1998_v16 }
  0x13   :  { %183 = vmatpush.msra.mxu3 %v2014_v17 }
  0x14   :  { %164 = vmatpush.msra.mxu2 %v1997_v18 }
  0x15   :  { %184 = vmatpush.msra.mxu3 %v2013_v19 }
  0x16   :  { %165 = vmatpush.msra.mxu2 %v1996_v22 }
  0x17   :  { %185 = vmatpush.msra.mxu3 %v2012_v23 }
  0x18   :  { %166 = vmatpush.msra.mxu2 %v1995_v26 }
  0x19   :  { %186 = vmatpush.msra.mxu3 %v2011_v27 }
  0x1a   :  { %167 = vmatpush.msra.mxu2 %v1994_v28 }
  0x1b   :  { %187 = vmatpush.msra.mxu3 %v2010_v29 }
  0x1c   :  { %168 = vmatpush.msra.mxu2 %v1993_v30 }
  0x1d   :  { %188 = vmatpush.msra.mxu3 %v2009_v31 }
  0x1e   :  { %7 = vsyncpa [#allocation3], 0  ;;  %v2086_v38 = vld [vmem:[%s3922_s1 + $0x3f8] sm:$0xff]  ;;  %v104_v39 = vld [vmem:[%s3921_s0 + $0x14] sm:$0xf]  ;;  %169 = vmatpush.msra.mxu2 %v1992_v32  ;;  %s2148_s13 = smov 64  }
  0x1f   :  { %v105_v40 = vld [vmem:[%s3921_s0 + $0x24] sm:$0xf]  ;;  %189 = vmatpush.msra.mxu3 %v2008_v33  ;;  %v2322_v42 = vld.sshfl [vmem:[#allocation1 + $0x8] sm:$0xff pattern:$0x73625140]  ;;  %v2069_v43 = vld [vmem:[%s3922_s1 + $0x370] sm:$0xff] }
  0x20   :  { %v2320_v41 = vld.sshfl [vmem:[#allocation1] sm:$0xff pattern:$0x73625140]  ;;  %v106_v44 = vld [vmem:[%s3921_s0 + $0x34] sm:$0xf]  ;;  %170 = vmatpush.msra.mxu2 %v1991_v34  ;;  %v31_v46 = vld [vmem:[%s3922_s1 + $0x78] sm:$0xff] }
  0x21   :  { %144 = vst [vmem:[#allocation1] ss:$4 sm:$0xff] %v103_v37  ;;  %190 = vmatpush.msra.mxu3 %v2007_v35  ;;  %v2085_v45 = vld [vmem:[%s3922_s1 + $0x3f0] sm:$0xff]  ;;  %v47_v47 = vld [vmem:[%s3922_s1 + $0xf8] sm:$0xff]  ;;  %v2068_v50 = vld [vmem:[%s3922_s1 + $0x368] sm:$0xff]  ;;  %63 = vmatpush.msra.mxu0 %v31_v46  ;;  %vm3953_vm0 = vcmask 523264  }
  0x22   :  { %146 = vst [vmem:[#allocation1 + $0x1] ss:$4 sm:$0xff] %v104_v39  ;;  %339 = vmatpush.msrb.mxu2 %v2070_v36  ;;  %v30_v48 = vld [vmem:[%s3922_s1 + $0x70] sm:$0xff]  ;;  %v2084_v51 = vld [vmem:[%s3922_s1 + $0x3e8] sm:$0xff]  ;;  %83 = vmatpush.msra.mxu1 %v47_v47  ;;  %v2067_v54 = vld [vmem:[%s3922_s1 + $0x360] sm:$0xff]  ;;  %vm403_vm1 = vcmask 1047556  }
  0x23   :  { %359 = vmatpush.msrb.mxu3 %v2086_v38  ;;  %148 = vst [vmem:[#allocation1 + $0x2] ss:$4 sm:$0xff] %v105_v40  ;;  %v46_v49 = vld [vmem:[%s3922_s1 + $0xf0] sm:$0xff]  ;;  %v29_v52 = vld [vmem:[%s3922_s1 + $0x68] sm:$0xff]  ;;  %v2083_v55 = vld [vmem:[%s3922_s1 + $0x3e0] sm:$0xff]  ;;  %64 = vmatpush.msra.mxu0 %v30_v48  ;;  %s2152_s14 = smov 12  }
  0x24   :  { %150 = vst [vmem:[#allocation1 + $0x3] ss:$4 sm:$0xff] %v106_v44  ;;  %340 = vmatpush.msrb.mxu2 %v2069_v43  ;;  %v45_v53 = vld [vmem:[%s3922_s1 + $0xe8] sm:$0xff]  ;;  %84 = vmatpush.msra.mxu1 %v46_v49  ;;  %v28_v56 = vld [vmem:[%s3922_s1 + $0x60] sm:$0xff]  ;;  %v2066_v58 = vld [vmem:[%s3922_s1 + $0x358] sm:$0xff]  ;;  %s2153_s15 = smov 8  }
  0x25   :  { %360 = vmatpush.msrb.mxu3 %v2085_v45  ;;  %v44_v57 = vld [vmem:[%s3922_s1 + $0xe0] sm:$0xff]  ;;  %v2082_v59 = vld [vmem:[%s3922_s1 + $0x3d8] sm:$0xff]  ;;  %v2065_v60 = vld [vmem:[%s3922_s1 + $0x350] sm:$0xff]  ;;  %65 = vmatpush.msra.mxu0 %v29_v52  ;;  %s2154_s16 = smov 4   ;;  %s2155_s17 = smov 28   ;;  %vm1859_vm2 = vcmask 31744  }
  0x26   :  { %341 = vmatpush.msrb.mxu2 %v2068_v50  ;;  %85 = vmatpush.msra.mxu1 %v45_v53  ;;  %v2081_v61 = vld [vmem:[%s3922_s1 + $0x3d0] sm:$0xff]  ;;  %v195_v62 = vld [vmem:[%s3921_s0 + $0x8] sm:$0xf]  ;;  %v196_v63 = vld [vmem:[%s3921_s0 + $0x18] sm:$0xf]  ;;  %s2156_s18 = smov 16  }
  0x27   :  { %361 = vmatpush.msrb.mxu3 %v2084_v51  ;;  %v197_v0 = vld [vmem:[%s3921_s0 + $0x28] sm:$0xf]  ;;  %66 = vmatpush.msra.mxu0 %v28_v56  ;;  %v27_v1 = vld [vmem:[%s3922_s1 + $0x58] sm:$0xff]  ;;  %v26_v8 = vld [vmem:[%s3922_s1 + $0x50] sm:$0xff]  ;;  %s2157_s19 = smov 76   ;;  %s2158_s20 = smov 44  }
  0x28   :  { %342 = vmatpush.msrb.mxu2 %v2067_v54  ;;  %86 = vmatpush.msra.mxu1 %v44_v57  ;;  %v43_v2 = vld [vmem:[%s3922_s1 + $0xd8] sm:$0xff]  ;;  %v2064_v5 = vld [vmem:[%s3922_s1 + $0x348] sm:$0xff]  ;;  %v42_v9 = vld [vmem:[%s3922_s1 + $0xd0] sm:$0xff]  ;;  %s2159_s21 = smov 20   ;;  %s2160_s22 = smov 88   ;;  %vm1861_vm3 = vcmask 64512  }
  0x29   :  { %362 = vmatpush.msrb.mxu3 %v2083_v55  ;;  %v2080_v6 = vld [vmem:[%s3922_s1 + $0x3c8] sm:$0xff]  ;;  %v198_v7 = vld [vmem:[%s3921_s0 + $0x38] sm:$0xf]  ;;  %v2063_v10 = vld [vmem:[%s3922_s1 + $0x340] sm:$0xff]  ;;  %67 = vmatpush.msra.mxu0 %v27_v1  ;;  %s2161_s23 = smov 36   ;;  %s2162_s24 = smov 40  }
  0x2a   :  { %343 = vmatpush.msrb.mxu2 %v2066_v58  ;;  %v2079_v11 = vld [vmem:[%s3922_s1 + $0x3c0] sm:$0xff]  ;;  %87 = vmatpush.msra.mxu1 %v43_v2  ;;  %v25_v12 = vld [vmem:[%s3922_s1 + $0x48] sm:$0xff]  ;;  %v2062_v14 = vld [vmem:[%s3922_s1 + $0x338] sm:$0xff]  ;;  %s2163_s25 = smov 100   ;;  %s2164_s26 = smov 60   ;;  %vm1863_vm4 = vcmask 97280  }
  0x2b   :  { %363 = vmatpush.msrb.mxu3 %v2082_v59  ;;  %v151_v3 = vld.sshfl [vmem:[#allocation1] sm:$0xff pattern:$0x73625140]  ;;  %v152_v4 = vld.sshfl [vmem:[#allocation1 + $0x8] sm:$0xff pattern:$0x73625140]  ;;  %68 = vmatpush.msra.mxu0 %v26_v8 }
  0x2c   :  { %171 = vmatmul.f32.vlgmr.msra.gmra.mxu2 %v151_v3  ;;  %191 = vmatmul.f32.vlgmr.msra.gmra.mxu3 %v152_v4  ;;  %236 = vst [vmem:[#allocation1] ss:$4 sm:$0xff] %v195_v62  ;;  %v41_v13 = vld [vmem:[%s3922_s1 + $0xc8] sm:$0xff]  ;;  %v2078_v15 = vld [vmem:[%s3922_s1 + $0x3b8] sm:$0xff]  ;;  %v24_v16 = vld [vmem:[%s3922_s1 + $0x40] sm:$0xff]  ;;  %s2165_s27 = smov 32  }
  0x2d   :  { %344 = vmatpush.msrb.mxu2 %v2065_v60  ;;  %364 = vmatpush.msrb.mxu3 %v2081_v61  ;;  %238 = vst [vmem:[#allocation1 + $0x1] ss:$4 sm:$0xff] %v196_v63  ;;  %v40_v17 = vld [vmem:[%s3922_s1 + $0xc0] sm:$0xff]  ;;  %v2061_v18 = vld [vmem:[%s3922_s1 + $0x330] sm:$0xff]  ;;  %v2060_v20 = vld [vmem:[%s3922_s1 + $0x328] sm:$0xff]  ;;  %s2166_s28 = smov 112  }
  0x2e   :  { %240 = vst [vmem:[#allocation1 + $0x2] ss:$4 sm:$0xff] %v197_v0  ;;  %88 = vmatpush.msra.mxu1 %v42_v9  ;;  %v2077_v19 = vld [vmem:[%s3922_s1 + $0x3b0] sm:$0xff]  ;;  %69 = vmatpush.msra.mxu0 %v25_v12  ;;  %v2076_v21 = vld [vmem:[%s3922_s1 + $0x3a8] sm:$0xff]  ;;  %v23_v22 = vld [vmem:[%s3922_s1 + $0x38] sm:$0xff]  ;;  %s2167_s29 = smov 52  }
  0x2f   :  { %345 = vmatpush.msrb.mxu2 %v2064_v5  ;;  %365 = vmatpush.msrb.mxu3 %v2080_v6  ;;  %242 = vst [vmem:[#allocation1 + $0x3] ss:$4 sm:$0xff] %v198_v7  ;;  %v39_v23 = vld [vmem:[%s3922_s1 + $0xb8] sm:$0xff]  ;;  %v2059_v24 = vld [vmem:[%s3922_s1 + $0x320] sm:$0xff]  ;;  %v287_v26 = vld [vmem:[%s3921_s0 + $0xc] sm:$0xf] }
  0x30   :  { %89 = vmatpush.msra.mxu1 %v41_v13  ;;  %v2075_v25 = vld [vmem:[%s3922_s1 + $0x3a0] sm:$0xff]  ;;  %v288_v27 = vld [vmem:[%s3921_s0 + $0x1c] sm:$0xf]  ;;  %70 = vmatpush.msra.mxu0 %v24_v16  ;;  %v289_v28 = vld [vmem:[%s3921_s0 + $0x2c] sm:$0xf]  ;;  %s2168_s30 = smov 56  }
  0x31   :  { %346 = vmatpush.msrb.mxu2 %v2063_v10  ;;  %366 = vmatpush.msrb.mxu3 %v2079_v11  ;;  %v22_v29 = vld [vmem:[%s3922_s1 + $0x30] sm:$0xff]  ;;  %v290_v33 = vld [vmem:[%s3921_s0 + $0x3c] sm:$0xf]  ;;  %v21_v34 = vld [vmem:[%s3922_s1 + $0x28] sm:$0xff]  ;;  %s2169_s3 = smov 124   ;;  %s2170_s4 = smov 68  }
  0x32   :  { %90 = vmatpush.msra.mxu1 %v40_v17  ;;  %v38_v30 = vld [vmem:[%s3922_s1 + $0xb0] sm:$0xff]  ;;  %71 = vmatpush.msra.mxu0 %v23_v22  ;;  %v37_v35 = vld [vmem:[%s3922_s1 + $0xa8] sm:$0xff]  ;;  %v2058_v36 = vld [vmem:[%s3922_s1 + $0x318] sm:$0xff]  ;;  %s2171_s0 = smov 48   ;;  %s2172_s5 = smov 80   ;;  %vm1865_vm5 = vcmask 130048  }
  0x33   :  { %347 = vmatpush.msrb.mxu2 %v2062_v14  ;;  %367 = vmatpush.msrb.mxu3 %v2078_v15  ;;  %v2074_v37 = vld [vmem:[%s3922_s1 + $0x398] sm:$0xff]  ;;  %v20_v38 = vld [vmem:[%s3922_s1 + $0x20] sm:$0xff]  ;;  %v2057_v40 = vld [vmem:[%s3922_s1 + $0x310] sm:$0xff]  ;;  %s2173_s6 = smov 72   ;;  %s2174_s7 = smov 92   ;;  %vm1867_vm6 = vcmask 162816  }
  0x34   :  { %91 = vmatpush.msra.mxu1 %v39_v23  ;;  %72 = vmatpush.msra.mxu0 %v22_v29  ;;  %v36_v39 = vld [vmem:[%s3922_s1 + $0xa0] sm:$0xff]  ;;  %v2073_v43 = vld [vmem:[%s3922_s1 + $0x390] sm:$0xff]  ;;  %v19_v44 = vld [vmem:[%s3922_s1 + $0x18] sm:$0xff]  ;;  %s2175_s8 = smov 104   ;;  %s2176_s9 = smov 84   ;;  %vm1869_vm7 = vcmask 195584  }
  0x35   :  { %348 = vmatpush.msrb.mxu2 %v2061_v18  ;;  %368 = vmatpush.msrb.mxu3 %v2077_v19  ;;  %v35_v45 = vld [vmem:[%s3922_s1 + $0x98] sm:$0xff]  ;;  %v2056_v46 = vld [vmem:[%s3922_s1 + $0x308] sm:$0xff]  ;;  %v18_v48 = vld [vmem:[%s3922_s1 + $0x10] sm:$0xff]  ;;  %s2177_s10 = smov 116   ;;  %s2178_s11 = smov 96   ;;  %vm1871_vm8 = vcmask 228352  }
  0x36   :  { %v2474_v31 = vld.sshfl [vmem:[#allocation1] sm:$0xff pattern:$0x73625140]  ;;  %v2476_v32 = vld.sshfl [vmem:[#allocation1 + $0x8] sm:$0xff pattern:$0x73625140]  ;;  %92 = vmatpush.msra.mxu1 %v38_v30  ;;  %73 = vmatpush.msra.mxu0 %v21_v34 }
  0x37   :  { %349 = vmatpush.msrb.mxu2 %v2060_v20  ;;  %369 = vmatpush.msrb.mxu3 %v2076_v21  ;;  %328 = vst [vmem:[#allocation1] ss:$4 sm:$0xff] %v287_v26  ;;  %v2072_v47 = vld [vmem:[%s3922_s1 + $0x388] sm:$0xff]  ;;  %v34_v49 = vld [vmem:[%s3922_s1 + $0x90] sm:$0xff]  ;;  %v2055_v50 = vld [vmem:[%s3922_s1 + $0x300] sm:$0xff]  ;;  %s2179_s12 = smov 108  }
  0x38   :  { %330 = vst [vmem:[#allocation1 + $0x1] ss:$4 sm:$0xff] %v288_v27  ;;  %93 = vmatpush.msra.mxu1 %v37_v35  ;;  %74 = vmatpush.msra.mxu0 %v20_v38  ;;  %v2071_v51 = vld [vmem:[%s3922_s1 + $0x380] sm:$0xff]  ;;  %v17_v52 = vld [vmem:[%s3922_s1 + $0x8] sm:$0xff]  ;;  %v2038_v58 = vld [vmem:[%s3922_s1 + $0x278] sm:$0xff]  ;;  %vm1873_vm9 = vcmask 261120  }
  0x39   :  { %350 = vmatpush.msrb.mxu2 %v2059_v24  ;;  %370 = vmatpush.msrb.mxu3 %v2075_v25  ;;  %332 = vst [vmem:[#allocation1 + $0x2] ss:$4 sm:$0xff] %v289_v28  ;;  %v33_v53 = vld [vmem:[%s3922_s1 + $0x88] sm:$0xff]  ;;  %v16_v56 = vld [vmem:[%s3922_s1] sm:$0xff]  ;;  %v2054_v59 = vld [vmem:[%s3922_s1 + $0x2f8] sm:$0xff]  ;;  %vm3951_vm10 = vcmask 293888  }
  0x3a   :  { %334 = vst [vmem:[#allocation1 + $0x3] ss:$4 sm:$0xff] %v290_v33  ;;  %94 = vmatpush.msra.mxu1 %v36_v39  ;;  %75 = vmatpush.msra.mxu0 %v19_v44  ;;  %v32_v57 = vld [vmem:[%s3922_s1 + $0x80] sm:$0xff]  ;;  %v2037_v60 = vld [vmem:[%s3922_s1 + $0x270] sm:$0xff]  ;;  %v2036_v62 = vld [vmem:[%s3922_s1 + $0x268] sm:$0xff]  ;;  %vm3950_vm11 = vcmask 326656  }
  0x3b   :  { %351 = vmatpush.msrb.mxu2 %v2058_v36  ;;  %371 = vmatpush.msrb.mxu3 %v2074_v37  ;;  %v2053_v61 = vld [vmem:[%s3922_s1 + $0x2f0] sm:$0xff]  ;;  %v2052_v63 = vld [vmem:[%s3922_s1 + $0x2e8] sm:$0xff]  ;;  %v2035_v0 = vld [vmem:[%s3922_s1 + $0x260] sm:$0xff]  ;;  %vm3946_vm12 = vcmask 359424   ;;  %vm3945_vm13 = vcmask 392192   ;;  %vm3947_vm14 = vcmask 424960  }
  0x3c   :  { %95 = vmatpush.msra.mxu1 %v35_v45  ;;  %76 = vmatpush.msra.mxu0 %v18_v48  ;;  %v2051_v1 = vld [vmem:[%s3922_s1 + $0x2e0] sm:$0xff]  ;;  %v2034_v2 = vld [vmem:[%s3922_s1 + $0x258] sm:$0xff]  ;;  %v2049_v3 = vld [vmem:[%s3922_s1 + $0x2d0] sm:$0xff]  ;;  %vm3948_vm15 = vcmask 457728  }
  0x3d   :  { %352 = vmatpush.msrb.mxu2 %v2057_v40  ;;  %372 = vmatpush.msrb.mxu3 %v2073_v43  ;;  %v2032_v4 = vld [vmem:[%s3922_s1 + $0x248] sm:$0xff]  ;;  %v2031_v6 = vld [vmem:[%s3922_s1 + $0x240] sm:$0xff]  ;;  %v2030_v8 = vld [vmem:[%s3922_s1 + $0x238] sm:$0xff] }
  0x3e   :  { %96 = vmatpush.msra.mxu1 %v34_v49  ;;  %77 = vmatpush.msra.mxu0 %v17_v52  ;;  %v2048_v5 = vld [vmem:[%s3922_s1 + $0x2c8] sm:$0xff]  ;;  %v2047_v7 = vld [vmem:[%s3922_s1 + $0x2c0] sm:$0xff]  ;;  %v2046_v9 = vld [vmem:[%s3922_s1 + $0x2b8] sm:$0xff] }
  0x3f   :  { %353 = vmatpush.msrb.mxu2 %v2056_v46  ;;  %373 = vmatpush.msrb.mxu3 %v2072_v47  ;;  %v2029_v10 = vld [vmem:[%s3922_s1 + $0x230] sm:$0xff]  ;;  %v2028_v12 = vld [vmem:[%s3922_s1 + $0x228] sm:$0xff]  ;;  %v2027_v14 = vld [vmem:[%s3922_s1 + $0x220] sm:$0xff] }
  0x40   :  { %97 = vmatpush.msra.mxu1 %v33_v53  ;;  %78 = vmatpush.msra.mxu0 %v16_v56  ;;  %v2045_v11 = vld [vmem:[%s3922_s1 + $0x2b0] sm:$0xff]  ;;  %v2044_v13 = vld [vmem:[%s3922_s1 + $0x2a8] sm:$0xff]  ;;  %v2043_v15 = vld [vmem:[%s3922_s1 + $0x2a0] sm:$0xff] }
  0x41   :  { %354 = vmatpush.msrb.mxu2 %v2055_v50  ;;  %374 = vmatpush.msrb.mxu3 %v2071_v51  ;;  %v335_v54 = vld.sshfl [vmem:[#allocation1] sm:$0xff pattern:$0x73625140]  ;;  %v336_v55 = vld.sshfl [vmem:[#allocation1 + $0x8] sm:$0xff pattern:$0x73625140] }
  0x42   :  { %355 = vmatmul.f32.vlgmr.msrb.gmra.mxu2 %v335_v54  ;;  %375 = vmatmul.f32.vlgmr.msrb.gmra.mxu3 %v336_v55  ;;  %v2026_v16 = vld [vmem:[%s3922_s1 + $0x218] sm:$0xff]  ;;  %v2025_v18 = vld [vmem:[%s3922_s1 + $0x210] sm:$0xff]  ;;  %v2024_v20 = vld [vmem:[%s3922_s1 + $0x208] sm:$0xff]  ;;  %v2149_v50 = vmov 1983009808  }
  0x43   :  { %98 = vmatpush.msra.mxu1 %v32_v57  ;;  %247 = vmatpush.msrb.mxu0 %v2038_v58  ;;  %v2042_v17 = vld [vmem:[%s3922_s1 + $0x298] sm:$0xff]  ;;  %v2041_v19 = vld [vmem:[%s3922_s1 + $0x290] sm:$0xff]  ;;  %v2040_v21 = vld [vmem:[%s3922_s1 + $0x288] sm:$0xff]  ;;  %v408_v51 = vunpack.c.l.s4 %v2149_v50  ;;  %v2150_v54 = vmov 1934713408  }
  0x44   :  { %79 = vmatmul.f32.vlgmr.msra.gmra.mxu0 %v2320_v41  ;;  %99 = vmatmul.f32.vlgmr.msra.gmra.mxu1 %v2322_v42  ;;  %v2050_v41 = vld [vmem:[%s3922_s1 + $0x2d8] sm:$0xff]  ;;  %v2033_v42 = vld [vmem:[%s3922_s1 + $0x250] sm:$0xff]  ;;  %v2023_v22 = vld [vmem:[%s3922_s1 + $0x200] sm:$0xff]  ;;  %v432_v55 = vunpack.c.l.s4 %v2150_v54 }
  0x45   :  { %267 = vmatpush.msrb.mxu1 %v2054_v59  ;;  %248 = vmatpush.msrb.mxu0 %v2037_v60  ;;  %v2039_v23 = vld [vmem:[%s3922_s1 + $0x280] sm:$0xff]  ;;  %v2649_v53 = vunpack.c.0.s8 %v408_v51  ;;  %s2151_s1 = smov 24  }
  0x47   :  { %268 = vmatpush.msrb.mxu1 %v2053_v61  ;;  %249 = vmatpush.msrb.mxu0 %v2036_v62  ;;  %v2654_v62 = vunpack.c.0.s8 %v432_v55 }
  0x49   :  { %269 = vmatpush.msrb.mxu1 %v2052_v63  ;;  %250 = vmatpush.msrb.mxu0 %v2035_v0 }
  0x4b   :  { %270 = vmatpush.msrb.mxu1 %v2051_v1  ;;  %251 = vmatpush.msrb.mxu0 %v2034_v2 }
  0x4d   :  { %271 = vmatpush.msrb.mxu1 %v2050_v41  ;;  %252 = vmatpush.msrb.mxu0 %v2033_v42 }
  0x4f   :  { %272 = vmatpush.msrb.mxu1 %v2049_v3  ;;  %253 = vmatpush.msrb.mxu0 %v2032_v4 }
  0x51   :  { %273 = vmatpush.msrb.mxu1 %v2048_v5  ;;  %254 = vmatpush.msrb.mxu0 %v2031_v6 }
  0x53   :  { %274 = vmatpush.msrb.mxu1 %v2047_v7  ;;  %255 = vmatpush.msrb.mxu0 %v2030_v8 }
  0x55   :  { %275 = vmatpush.msrb.mxu1 %v2046_v9  ;;  %256 = vmatpush.msrb.mxu0 %v2029_v10 }
  0x57   :  { %276 = vmatpush.msrb.mxu1 %v2045_v11  ;;  %257 = vmatpush.msrb.mxu0 %v2028_v12 }
  0x59   :  { %277 = vmatpush.msrb.mxu1 %v2044_v13  ;;  %258 = vmatpush.msrb.mxu0 %v2027_v14 }
  0x5b   :  { %278 = vmatpush.msrb.mxu1 %v2043_v15  ;;  %259 = vmatpush.msrb.mxu0 %v2026_v16 }
  0x5d   :  { %279 = vmatpush.msrb.mxu1 %v2042_v17  ;;  %260 = vmatpush.msrb.mxu0 %v2025_v18 }
  0x5f   :  { %280 = vmatpush.msrb.mxu1 %v2041_v19  ;;  %261 = vmatpush.msrb.mxu0 %v2024_v20 }
  0x61   :  { %281 = vmatpush.msrb.mxu1 %v2040_v21  ;;  %262 = vmatpush.msrb.mxu0 %v2023_v22 }
  0x62   :  { %263 = vmatmul.f32.vlgmr.msrb.gmra.mxu0 %v2474_v31 }
  0x63   :  { %282 = vmatpush.msrb.mxu1 %v2039_v23 }
  0x64   :  { %283 = vmatmul.f32.vlgmr.msrb.gmra.mxu1 %v2476_v32 }
  0xaf   :  { %v172_v24 = vpop.f32.mrf.mxu2  ;;  %v192_v25 = vpop.f32.mrf.mxu3 }
  0xb0   :  { %v193_v26 = vadd.f32 %v192_v25, %v172_v24 }
  0xb2   :  { %380 = vrot.lane.b32.xlu0 %v193_v26, %s2148_s13 }
  0xc1   :  { %v80_v30 = vpop.f32.mrf.mxu0  ;;  %v100_v33 = vpop.f32.mrf.mxu1 }
  0xc2   :  { %v101_v34 = vadd.f32 %v100_v33, %v80_v30 }
  0xc5   :  { %v356_v27 = vpop.f32.mrf.mxu2  ;;  %v376_v28 = vpop.f32.mrf.mxu3 }
  0xc6   :  { %v377_v29 = vadd.f32 %v376_v28, %v356_v27 }
  0xc8   :  { %384 = vrot.lane.b32.xlu0 %v377_v29, %s2148_s13 }
  0xdf   :  { %v264_v37 = vpop.f32.mrf.mxu0 }
  0xe1   :  { %v284_v38 = vpop.f32.mrf.mxu1 }
  0xe2   :  { %v285_v39 = vadd.f32 %v284_v38, %v264_v37 }
 0x124   :  { %v381_v35 = vpop.permute.xlu0 %380 }
 0x125   :  { %v388_v31 = vsel %vm3953_vm0, %v101_v34, %v381_v35 }
 0x126   :  { %v390_v36 = vmax.f32 %v388_v31, 0.0 }
 0x128   :  { %v392_v32 = vmin.f32 %v390_v36, 1.0 }
 0x12a   :  { %395 = vrot.lane.b32.xlu1 %v392_v32, %s2148_s13  ;;  %v405_v45 = vrot.slane %v392_v32, 4 }
 0x13a   :  { %v385_v40 = vpop.permute.xlu0 %384 }
 0x13b   :  { %v389_v43 = vsel %vm3953_vm0, %v285_v39, %v385_v40 }
 0x13c   :  { %v391_v44 = vmax.f32 %v389_v43, 0.0 }
 0x13e   :  { %v393_v46 = vmin.f32 %v391_v44, 1.0 }
 0x140   :  { %v402_v47 = vrot.slane %v393_v46, 4  ;;  %v406_v48 = vsel %vm403_vm1, %v393_v46, %v405_v45  ;;  %399 = vrot.lane.b32.xlu1 %v393_v46, %s2148_s13 }
 0x141   :  { %v414_v56 = vperm.slane %v406_v48, %v2649_v53 }
 0x142   :  { %v404_v49 = vsel %vm403_vm1, %v402_v47, %v392_v32 }
 0x143   :  { %v410_v59 = vperm.slane %v404_v49, %v2649_v53  ;;  %v441_v0 = vrot.slane %v414_v56, 4 }
 0x145   :  { %v429_v42 = vrot.slane %v410_v59, 4 }
 0x19c   :  { %v396_v52 = vpop.permute.xlu1 %395 }
 0x19d   :  { %v417_v57 = vrot.slane %v396_v52, 4 }
 0x1b2   :  { %v400_v58 = vpop.permute.xlu1 %399 }
 0x1b3   :  { %v415_v60 = vrot.slane %v400_v58, 4  ;;  %v418_v61 = vsel %vm403_vm1, %v400_v58, %v417_v57 }
 0x1b4   :  { %v426_v63 = vperm.slane %v418_v61, %v2649_v53 }
 0x1b5   :  { %v416_v1 = vsel %vm403_vm1, %v415_v60, %v396_v52 }
 0x1b6   :  { %v442_v2 = vsel %vm403_vm1, %v426_v63, %v441_v0  ;;  %v422_v41 = vperm.slane %v416_v1, %v2649_v53  ;;  %v439_v8 = vrot.slane %v426_v63, 4 }
 0x1b7   :  { %v450_v3 = vperm.slane %v442_v2, %v2654_v62 }
 0x1b8   :  { %v430_v4 = vsel %vm403_vm1, %v422_v41, %v429_v42  ;;  %v427_v9 = vrot.slane %v422_v41, 4  ;;  %v440_v10 = vsel %vm403_vm1, %v439_v8, %v414_v56 }
 0x1b9   :  { %651 = vxpose.xlu2.b32.start.end [1/1] (short) (narrow) %v450_v3, 64  ;;  %v438_v5 = vperm.slane %v430_v4, %v2654_v62  ;;  %v446_v12 = vperm.slane %v440_v10, %v2654_v62  ;;  %v457_v17 = vrot.slane %v450_v3, 4 }
 0x1ba   :  { %v428_v11 = vsel %vm403_vm1, %v427_v9, %v410_v59 }
 0x1bb   :  { %523 = vxpose.xlu0.b32.start.end [1/1] (short) (narrow) %v438_v5, 64  ;;  %v453_v6 = vrot.slane %v438_v5, 4  ;;  %v434_v13 = vperm.slane %v428_v11, %v2654_v62  ;;  %v455_v14 = vrot.slane %v446_v12, 4  ;;  %v458_v19 = vsel %vm403_vm1, 0.0, %v457_v17 }
 0x1bd   :  { %v454_v7 = vsel %vm403_vm1, 0.0, %v453_v6  ;;  %v456_v15 = vsel %vm403_vm1, 0.0, %v455_v14  ;;  %v451_v16 = vrot.slane %v434_v13, 4 }
 0x1be   :  { %555 = vxpose.xlu1.b32.start.end [1/1] (short) (narrow) %v454_v7, 64 }
 0x1bf   :  { %v452_v18 = vsel %vm403_vm1, 0.0, %v451_v16 }
 0x1f9   :  { %459 = vxpose.xlu2.b32.start.end [1/1] (short) (narrow) %v434_v13, 64 }
 0x1fb   :  { %587 = vxpose.xlu0.b32.start.end [1/1] (short) (narrow) %v446_v12, 64 }
 0x1fe   :  { %619 = vxpose.xlu1.b32.start.end [1/1] (short) (narrow) %v456_v15, 64 }
 0x239   :  { %491 = vxpose.xlu2.b32.start.end [1/1] (short) (narrow) %v452_v18, 64 }
 0x23b   :  { %683 = vxpose.xlu0.b32.start.end [1/1] (short) (narrow) %v458_v19, 64 }
 0x252   :  { %v2671_v20 = vpop.trf.xlu2 }
 0x253   :  { %v739_v14 = vrot.slane %v2671_v20, 4 }
 0x25a   :  { %v2673_v21 = vpop.trf.xlu2 }
 0x25b   :  { %v851_v15 = vrot.slane %v2673_v21, 4 }
 0x25f   :  { %v539_v22 = vpop.trf.xlu0 }
 0x260   :  { %v715_v10 = vrot.slane %v539_v22, 4 }
 0x262   :  { %v2675_v23 = vpop.trf.xlu2  ;;  %v2685_v30 = vpop.trf.xlu1 }
 0x263   :  { %v963_v19 = vrot.slane %v2675_v23, 4 }
 0x267   :  { %v540_v24 = vpop.trf.xlu0 }
 0x268   :  { %v827_v43 = vrot.slane %v540_v24, 4 }
 0x26a   :  { %v2677_v25 = vpop.trf.xlu2  ;;  %v2689_v35 = vpop.trf.xlu1 }
 0x26f   :  { %v2679_v26 = vpop.trf.xlu0 }
 0x272   :  { %v2681_v27 = vpop.trf.xlu2  ;;  %v2693_v32 = vpop.trf.xlu1 }
 0x277   :  { %v542_v28 = vpop.trf.xlu0 }
 0x278   :  { %v1051_v56 = vrot.slane %v542_v28, 4 }
 0x27a   :  { %v2683_v29 = vpop.trf.xlu2  ;;  %v2697_v39 = vpop.trf.xlu1 }
 0x27f   :  { %v543_v33 = vpop.trf.xlu0 }
 0x280   :  { %v1163_v0 = vrot.slane %v543_v33, 4 }
 0x282   :  { %v2687_v34 = vpop.trf.xlu2  ;;  %v2703_v48 = vpop.trf.xlu1 }
 0x287   :  { %v544_v31 = vpop.trf.xlu0 }
 0x288   :  { %v1275_v5 = vrot.slane %v544_v31, 4 }
 0x28a   :  { %v2691_v36 = vpop.trf.xlu2  ;;  %v2709_v54 = vpop.trf.xlu1 }
 0x28f   :  { %v2695_v37 = vpop.trf.xlu0 }
 0x292   :  { %v475_v38 = vpop.trf.xlu2  ;;  %v2719_v61 = vpop.trf.xlu1 }
 0x293   :  { %v717_v7 = vrot.slane %v475_v38, 4  ;;  %v716_v16 = vsel %vm403_vm1, %v715_v10, %v475_v38 }
 0x295   :  { %v718_v17 = vsel %vm403_vm1, %v539_v22, %v717_v7  ;;  %v1411_v22 = vrot.slane %v2687_v34, 4 }
 0x297   :  { %v2699_v40 = vpop.trf.xlu0 }
 0x29a   :  { %v476_v44 = vpop.trf.xlu2  ;;  %v2729_v3 = vpop.trf.xlu1 }
 0x29b   :  { %v828_v45 = vsel %vm403_vm1, %v827_v43, %v476_v44  ;;  %v829_v46 = vrot.slane %v476_v44, 4  ;;  %v1387_v43 = vrot.slane %v2695_v37, 4  ;;  %v727_v44 = vrot.slane %v2685_v30, 4 }
 0x29d   :  { %v830_v47 = vsel %vm403_vm1, %v540_v24, %v829_v46  ;;  %v1075_v24 = vrot.slane %v2677_v25, 4  ;;  %v2757_v46 = vperm.slane %v716_v16, %v2649_v53 }
 0x29f   :  { %v603_v49 = vpop.trf.xlu0  ;;  %v765_v10 = vrot.slane %v2757_v46, 4 }
 0x2a0   :  { %v741_v13 = vrot.slane %v603_v49, 4  ;;  %v740_v38 = vsel %vm403_vm1, %v739_v14, %v603_v49 }
 0x2a2   :  { %v477_v50 = vpop.trf.xlu2  ;;  %v2739_v12 = vpop.trf.xlu1 }
 0x2a3   :  { %v941_v51 = vrot.slane %v477_v50, 4 }
 0x2a5   :  { %v2707_v52 = vsel %vm403_vm1, %v2679_v26, %v941_v51  ;;  %v2760_v51 = vperm.slane %v718_v17, %v2649_v53  ;;  %v1499_v17 = vrot.slane %v2699_v40, 4 }
 0x2a6   :  { %v2809_v7 = vperm.slane %v2707_v52, %v2649_v53 }
 0x2a7   :  { %v2711_v55 = vpop.trf.xlu0 }
 0x2aa   :  { %v478_v57 = vpop.trf.xlu2  ;;  %v2792_v16 = vpop.trf.xlu1 }
 0x2ab   :  { %v2714_v58 = vsel %vm403_vm1, %v1051_v56, %v478_v57  ;;  %v1053_v59 = vrot.slane %v478_v57, 4  ;;  %v2765_v57 = vperm.slane %v828_v45, %v2649_v53 }
 0x2ad   :  { %v2717_v60 = vsel %vm403_vm1, %v542_v28, %v1053_v59  ;;  %v939_v28 = vrot.slane %v2679_v26, 4  ;;  %v742_v26 = vsel %vm403_vm1, %v2671_v20, %v741_v13  ;;  %v853_v59 = vrot.slane %v2711_v55, 4 }
 0x2ae   :  { %v839_v20 = vrot.slane %v2689_v35, 4 }
 0x2af   :  { %v2721_v63 = vpop.trf.xlu0  ;;  %v940_v45 = vsel %vm403_vm1, %v939_v28, %v477_v50  ;;  %v877_v50 = vrot.slane %v2765_v57, 4  ;;  %v852_v28 = vsel %vm403_vm1, %v851_v15, %v2711_v55 }
 0x2b0   :  { %v965_v13 = vrot.slane %v2721_v63, 4  ;;  %v964_v55 = vsel %vm403_vm1, %v963_v19, %v2721_v63  ;;  %v2815_v15 = vperm.slane %v852_v28, %v2649_v53 }
 0x2b2   :  { %v479_v1 = vpop.trf.xlu2 }
 0x2b3   :  { %v2724_v2 = vsel %vm403_vm1, %v1163_v0, %v479_v1  ;;  %v1165_v41 = vrot.slane %v479_v1, 4  ;;  %v1523_v1 = vrot.slane %v2691_v36, 4 }
 0x2b5   :  { %v2727_v42 = vsel %vm403_vm1, %v543_v33, %v1165_v41  ;;  %v1187_v33 = vrot.slane %v2681_v27, 4  ;;  %v2773_v41 = vperm.slane %v830_v47, %v2649_v53  ;;  %v777_v47 = vrot.slane %v2760_v51, 4 }
 0x2b7   :  { %v2731_v4 = vpop.trf.xlu0 }
 0x2b8   :  { %v1076_v63 = vsel %vm403_vm1, %v1075_v24, %v2731_v4 }
 0x2ba   :  { %v480_v6 = vpop.trf.xlu2 }
 0x2bb   :  { %v2734_v8 = vsel %vm403_vm1, %v1275_v5, %v480_v6  ;;  %v1277_v9 = vrot.slane %v480_v6, 4  ;;  %v2776_v5 = vperm.slane %v740_v38, %v2649_v53  ;;  %v2780_v6 = vperm.slane %v742_v26, %v2649_v53 }
 0x2bc   :  { %v2828_v38 = vperm.slane %v2717_v60, %v2649_v53  ;;  %v2835_v26 = vperm.slane %v964_v55, %v2649_v53  ;;  %v2844_v60 = vperm.slane %v2724_v2, %v2649_v53 }
 0x2bd   :  { %v2737_v11 = vsel %vm403_vm1, %v544_v31, %v1277_v9  ;;  %v1299_v31 = vrot.slane %v2683_v29, 4 }
 0x2bf   :  { %v2745_v18 = vpop.trf.xlu0 }
 0x2c2   :  { %v481_v56 = vpop.trf.xlu2 }
 0x2c3   :  { %v2769_v0 = vsel %vm403_vm1, %v1387_v43, %v481_v56  ;;  %v1389_v49 = vrot.slane %v481_v56, 4  ;;  %v2803_v56 = vperm.slane %v940_v45, %v2649_v53  ;;  %v2822_v45 = vperm.slane %v2714_v58, %v2649_v53 }
 0x2c4   :  { %v1189_v58 = vrot.slane %v2745_v18, 4 }
 0x2c5   :  { %v2786_v9 = vsel %vm403_vm1, %v2695_v37, %v1389_v49  ;;  %v854_v37 = vsel %vm403_vm1, %v2673_v21, %v853_v59  ;;  %v1077_v21 = vrot.slane %v2731_v4, 4  ;;  %v966_v49 = vsel %vm403_vm1, %v2675_v23, %v965_v13  ;;  %v2876_v23 = vpop.trf.xlu1 }
 0x2c6   :  { %v2818_v59 = vperm.slane %v854_v37, %v2649_v53  ;;  %v2840_v13 = vperm.slane %v966_v49, %v2649_v53  ;;  %v2857_v49 = vperm.slane %v1076_v63, %v2649_v53  ;;  %v1190_v63 = vsel %vm403_vm1, %v2681_v27, %v1189_v58 }
 0x2c7   :  { %v608_v43 = vpop.trf.xlu0  ;;  %v1078_v4 = vsel %vm403_vm1, %v2677_v25, %v1077_v21  ;;  %v2885_v37 = vperm.slane %v2737_v11, %v2649_v53  ;;  %v2892_v58 = vperm.slane %v1190_v63, %v2649_v53  ;;  %v753_v25 = vrot.slane %v2739_v12, 4 }
 0x2c8   :  { %v1301_v2 = vrot.slane %v608_v43, 4  ;;  %v1300_v63 = vsel %vm403_vm1, %v1299_v31, %v608_v43 }
 0x2ca   :  { %v482_v52 = vpop.trf.xlu2 }
 0x2cb   :  { %v1500_v19 = vsel %vm403_vm1, %v1499_v17, %v482_v52  ;;  %v1501_v28 = vrot.slane %v482_v52, 4  ;;  %v2854_v52 = vperm.slane %v2727_v42, %v2649_v53  ;;  %v2868_v17 = vperm.slane %v2734_v8, %v2649_v53 }
 0x2cc   :  { %v1188_v42 = vsel %vm403_vm1, %v1187_v33, %v2745_v18 }
 0x2cd   :  { %v1502_v24 = vsel %vm403_vm1, %v2699_v40, %v1501_v28  ;;  %v2864_v28 = vperm.slane %v1078_v4, %v2649_v53  ;;  %v2889_v33 = vperm.slane %v1188_v42, %v2649_v53  ;;  %v2903_v42 = vperm.slane %v2769_v0, %v2649_v53 }
 0x2cf   :  { %v609_v40 = vpop.trf.xlu0  ;;  %3961 = vst [vmem:[#allocation5_spill] sm:$0xff] %v2903_v42 }
 0x2d0   :  { %v1413_v27 = vrot.slane %v609_v40, 4 }
 0x2d2   :  { %v507_v18 = vpop.trf.xlu2 }
 0x2d3   :  { %v728_v4 = vsel %vm403_vm1, %v727_v44, %v507_v18  ;;  %v729_v8 = vrot.slane %v507_v18, 4  ;;  %v1302_v44 = vsel %vm403_vm1, %v2683_v29, %v1301_v2  ;;  %v1412_v29 = vsel %vm403_vm1, %v1411_v22, %v609_v40 }
 0x2d4   :  { %v734_v11 = vperm.slane %v728_v4, %v2649_v53  ;;  %v2927_v2 = vperm.slane %v1300_v63, %v2649_v53  ;;  %v2937_v22 = vperm.slane %v1500_v19, %v2649_v53  ;;  %v2942_v40 = vperm.slane %v1502_v24, %v2649_v53 }
 0x2d5   :  { %v730_v18 = vsel %vm403_vm1, %v2685_v30, %v729_v8  ;;  %v2924_v30 = vperm.slane %v2786_v9, %v2649_v53  ;;  %v1414_v63 = vsel %vm403_vm1, %v2687_v34, %v1413_v27  ;;  %v2947_v0 = vperm.slane %v1412_v29, %v2649_v53 }
 0x2d6   :  { %v738_v21 = vperm.slane %v730_v18, %v2649_v53  ;;  %v763_v4 = vrot.slane %v734_v11, 4  ;;  %v766_v55 = vsel %vm403_vm1, %v734_v11, %v765_v10  ;;  %v2934_v18 = vperm.slane %v1302_v44, %v2649_v53  ;;  %3964 = vst [vmem:[#allocation8_spill] sm:$0xff] %v2937_v22 }
 0x2d7   :  { %v610_v43 = vpop.trf.xlu0  ;;  %3962 = vst [vmem:[#allocation6_spill] sm:$0xff] %v2924_v30  ;;  %v865_v11 = vrot.slane %v2792_v16, 4 }
 0x2d8   :  { %v775_v8 = vrot.slane %v738_v21, 4  ;;  %v778_v10 = vsel %vm403_vm1, %v738_v21, %v777_v47  ;;  %3963 = vst [vmem:[#allocation7_spill] sm:$0xff] %v2934_v18  ;;  %v764_v9 = vsel %vm403_vm1, %v763_v4, %v2757_v46  ;;  %v2949_v21 = vpop.trf.xlu1  ;;  %v1524_v19 = vsel %vm403_vm1, %v1523_v1, %v610_v43 }
 0x2d9   :  { %3965 = vst [vmem:[#allocation9_spill] sm:$0xff] %v2942_v40  ;;  %v1525_v46 = vrot.slane %v610_v43, 4  ;;  %v2966_v1 = vperm.slane %v1414_v63, %v2649_v53  ;;  %v2969_v43 = vperm.slane %v766_v55, %v2654_v62  ;;  %v2974_v34 = vperm.slane %v1524_v19, %v2649_v53 }
 0x2da   :  { %3966 = vst [vmem:[#allocation10_spill] sm:$0xff] %v2947_v0  ;;  %v508_v47 = vpop.trf.xlu2  ;;  %v776_v44 = vsel %vm403_vm1, %v775_v8, %v2760_v51  ;;  %v2982_v51 = vperm.slane %v778_v10, %v2654_v62  ;;  %v2985_v55 = vperm.slane %v764_v9, %v2654_v62 }
 0x2db   :  { %v840_v24 = vsel %vm403_vm1, %v839_v20, %v508_v47  ;;  %v841_v4 = vrot.slane %v508_v47, 4  ;;  %3967 = vst [vmem:[#allocation11_spill] sm:$0xff] %v2966_v1  ;;  %v1526_v27 = vsel %vm403_vm1, %v2691_v36, %v1525_v46  ;;  %v2995_v10 = vperm.slane %v776_v44, %v2654_v62 }
 0x2dc   :  { %v846_v29 = vperm.slane %v840_v24, %v2649_v53  ;;  %3968 = vst [vmem:[#allocation12_spill] sm:$0xff] %v2974_v34  ;;  %v2998_v9 = vperm.slane %v1526_v27, %v2649_v53  ;;  %v3971_v36 = vrot.slane %v2780_v6, 4  ;;  %v3972_v24 = vrot.slane %v2776_v5, 4 }
 0x2dd   :  { %v842_v8 = vsel %vm403_vm1, %v2689_v35, %v841_v4  ;;  %3969 = vst [vmem:[#allocation13_spill] sm:$0xff] %v2985_v55  ;;  %v817_v35 = vrot.slane %v2969_v43, 4 }
 0x2de   :  { %v875_v20 = vrot.slane %v846_v29, 4  ;;  %v878_v19 = vsel %vm403_vm1, %v846_v29, %v877_v50  ;;  %3970 = vst [vmem:[#allocation14_spill] sm:$0xff] %v2998_v9  ;;  %v850_v4 = vperm.slane %v842_v8, %v2649_v53  ;;  %v813_v8 = vrot.slane %v2985_v55, 4 }
 0x2df   :  { %v699_v63 = vpop.trf.xlu0  ;;  %v3010_v14 = vperm.slane %v878_v19, %v2654_v62 }
 0x2e0   :  { %v751_v47 = vrot.slane %v699_v63, 4  ;;  %v754_v31 = vsel %vm403_vm1, %v699_v63, %v753_v25  ;;  %v876_v63 = vsel %vm403_vm1, %v875_v20, %v2765_v57  ;;  %v887_v9 = vrot.slane %v850_v4, 4 }
 0x2e1   :  { %v762_v46 = vperm.slane %v754_v31, %v2649_v53  ;;  %v929_v57 = vrot.slane %v3010_v14, 4 }
 0x2e2   :  { %v752_v50 = vsel %vm403_vm1, %v751_v47, %v2739_v12  ;;  %v509_v29 = vpop.trf.xlu2  ;;  %v825_v12 = vrot.slane %v2982_v51, 4  ;;  %v3015_v47 = vpop.trf.xlu1 }
 0x2e3   :  { %v758_v31 = vperm.slane %v752_v50, %v2649_v53  ;;  %v802_v44 = vsel %vm403_vm1, %v762_v46, %v3971_v36  ;;  %v799_v50 = vrot.slane %v762_v46, 4  ;;  %v953_v40 = vrot.slane %v509_v29, 4 }
 0x2e4   :  { %v810_v27 = vperm.slane %v802_v44, %v2654_v62  ;;  %v3973_v44 = vrot.slane %v2693_v32, 4  ;;  %v3030_v46 = vperm.slane %v876_v63, %v2654_v62 }
 0x2e5   :  { %v787_v25 = vrot.slane %v758_v31, 4  ;;  %v790_v36 = vsel %vm403_vm1, %v758_v31, %v3972_v24  ;;  %v800_v0 = vsel %vm403_vm1, %v799_v50, %v2780_v6  ;;  %v3975_v6 = vrot.slane %v2697_v39, 4 }
 0x2e6   :  { %v952_v55 = vsel %vm403_vm1, %v3973_v44, %v509_v29  ;;  %v823_v34 = vrot.slane %v810_v27, 4  ;;  %v798_v30 = vperm.slane %v790_v36, %v2654_v62  ;;  %v3974_v29 = vrot.slane %v2773_v41, 4 }
 0x2e7   :  { %v700_v1 = vpop.trf.xlu0  ;;  %v788_v19 = vsel %vm403_vm1, %v787_v25, %v2776_v5  ;;  %v3040_v36 = vperm.slane %v952_v55, %v2649_v53  ;;  %v3977_v25 = vrot.slane %v2803_v56, 4 }
 0x2e8   :  { %v863_v24 = vrot.slane %v700_v1, 4  ;;  %v824_v31 = vsel %vm403_vm1, %v823_v34, %v2982_v51  ;;  %v890_v44 = vsel %vm403_vm1, %v850_v4, %v3974_v29  ;;  %v818_v63 = vsel %vm403_vm1, %v798_v30, %v817_v35 }
 0x2e9   :  { %1632 = vrot.lane.b32.xlu1 %v824_v31, %s2151_s1  ;;  %v815_v20 = vrot.slane %v798_v30, 4  ;;  %v954_v34 = vsel %vm403_vm1, %v2693_v32, %v953_v40  ;;  %v866_v51 = vsel %vm403_vm1, %v700_v1, %v865_v11  ;;  %1620 = vrot.lane.b32.xlu0 %v818_v63, %s2152_s14  ;;  %v3054_v4 = vsel %vm403_vm1, %v887_v9, %v2773_v41 }
 0x2ea   :  { %v864_v5 = vsel %vm403_vm1, %v863_v24, %v2792_v16  ;;  %v510_v55 = vpop.trf.xlu2  ;;  %v3061_v40 = vperm.slane %v788_v19, %v2654_v62  ;;  %v806_v11 = vperm.slane %v800_v0, %v2654_v62  ;;  %v925_v1 = vrot.slane %v3030_v46, 4 }
 0x2eb   :  { %v870_v30 = vperm.slane %v864_v5, %v2649_v53  ;;  %v1064_v35 = vsel %vm403_vm1, %v3975_v6, %v510_v55  ;;  %v1065_v32 = vrot.slane %v510_v55, 4  ;;  %v816_v16 = vsel %vm403_vm1, %v815_v20, %v2969_v43 }
 0x2ec   :  { %3976 = vst [vmem:[#allocation15_spill] sm:$0xff] %v3061_v40  ;;  %v3068_v41 = vperm.slane %v890_v44, %v2654_v62  ;;  %v990_v50 = vsel %vm403_vm1, %v3040_v36, %v3977_v25  ;;  %1616 = vrot.lane.b32.xlu2 %v816_v16, %s2153_s15  ;;  %v3978_v43 = vrot.slane %v2815_v15, 4  ;;  %v3080_v19 = vperm.slane %v954_v34, %v2649_v53 }
 0x2ed   :  { %v899_v24 = vrot.slane %v870_v30, 4  ;;  %v3083_v20 = vperm.slane %v866_v51, %v2649_v53  ;;  %v3086_v31 = vperm.slane %v1064_v35, %v2649_v53  ;;  %v826_v29 = vsel %vm403_vm1, %v810_v27, %v825_v12 }
 0x2ee   :  { %v902_v0 = vsel %vm403_vm1, %v870_v30, %v3978_v43  ;;  %v1066_v44 = vsel %vm403_vm1, %v2697_v39, %v1065_v32  ;;  %v814_v5 = vsel %vm403_vm1, %v3061_v40, %v813_v8  ;;  %v3979_v51 = vrot.slane %v2876_v23, 4  ;;  %v3115_v43 = vpop.trf.xlu1 }
 0x2ef   :  { %v701_v63 = vpop.trf.xlu0  ;;  %v910_v55 = vperm.slane %v902_v0, %v2654_v62  ;;  %v900_v34 = vsel %vm403_vm1, %v899_v24, %v2815_v15  ;;  %v819_v35 = vrot.slane %v806_v11, 4  ;;  %v3100_v27 = vperm.slane %v990_v50, %v2654_v62 }
 0x2f0   :  { %v975_v30 = vrot.slane %v701_v63, 4  ;;  %v978_v6 = vsel %vm403_vm1, %v701_v63, %v3979_v51  ;;  %v906_v12 = vperm.slane %v900_v34, %v2654_v62  ;;  %v3110_v16 = vperm.slane %v1066_v44, %v2649_v53 }
 0x2f1   :  { %v3103_v39 = vperm.slane %v978_v6, %v2649_v53  ;;  %1612 = vrot.lane.b32.xlu1 %v814_v5, %s2154_s16  ;;  %v930_v8 = vsel %vm403_vm1, %v910_v55, %v929_v57  ;;  %v927_v15 = vrot.slane %v910_v55, 4  ;;  %v1099_v25 = vrot.slane %v3086_v31, 4 }
 0x2f2   :  { %v976_v50 = vsel %vm403_vm1, %v975_v30, %v2876_v23  ;;  %v511_v24 = vpop.trf.xlu2  ;;  %v911_v0 = vrot.slane %v3083_v20, 4  ;;  %v3980_v63 = vrot.slane %v2840_v13, 4  ;;  %v3981_v44 = vrot.slane %v2809_v7, 4 }
 0x2f3   :  { %v3119_v57 = vperm.slane %v976_v50, %v2649_v53  ;;  %v3982_v23 = vrot.slane %v2995_v10, 4  ;;  %v3138_v51 = vsel %vm403_vm1, %v906_v12, %v925_v1  ;;  %v3983_v6 = vrot.slane %v2818_v59, 4 }
 0x2f4   :  { %v1026_v5 = vsel %vm403_vm1, %v3103_v39, %v3980_v63  ;;  %v1002_v55 = vsel %vm403_vm1, %v3080_v19, %v3981_v44  ;;  %1636 = vrot.lane.b32.xlu2 %v826_v29, %s2155_s17  ;;  %v820_v63 = vsel %vm403_vm1, %v819_v35, %v2995_v10  ;;  %v1041_v44 = vrot.slane %v3100_v27, 4 }
 0x2f5   :  { %v3132_v34 = vsel %vm403_vm1, %v806_v11, %v3982_v23  ;;  %v3135_v30 = vperm.slane %v1026_v5, %v2654_v62  ;;  %v914_v50 = vsel %vm403_vm1, %v3083_v20, %v3983_v6  ;;  %v3984_v11 = vrot.slane %v2835_v26, 4 }
 0x2f6   :  { %v3154_v1 = vsel %vm403_vm1, %v927_v15, %v3010_v14  ;;  %v1111_v23 = vrot.slane %v3110_v16, 4  ;;  %v3161_v29 = vperm.slane %v1002_v55, %v2654_v62  ;;  %v1100_v10 = vsel %vm403_vm1, %v1099_v25, %v2822_v45 }
 0x2f7   :  { %v1014_v5 = vsel %vm403_vm1, %v3119_v57, %v3984_v11  ;;  %v1177_v35 = vrot.slane %v511_v24, 4  ;;  %v702_v6 = vpop.trf.xlu0  ;;  %v1047_v11 = vrot.slane %v3135_v30, 4  ;;  %v922_v32 = vperm.slane %v914_v50, %v2654_v62 }
 0x2f8   :  { %v3158_v20 = vperm.slane %v1014_v5, %v2654_v62  ;;  %v937_v14 = vrot.slane %v3068_v41, 4  ;;  %v3985_v15 = vrot.slane %v2703_v48, 4  ;;  %v1087_v5 = vrot.slane %v702_v6, 4 }
 0x2f9   :  { %v3986_v40 = vrot.slane %v2949_v21, 4  ;;  %1624 = vrot.lane.b32.xlu1 %v820_v63, %s2156_s18  ;;  %v1048_v50 = vsel %vm403_vm1, %v1047_v11, %v3161_v29  ;;  %v923_v63 = vrot.slane %v906_v12, 4  ;;  %v912_v12 = vsel %vm403_vm1, %v911_v0, %v2818_v59 }
 0x2fa   :  { %v1176_v9 = vsel %vm403_vm1, %v3985_v15, %v511_v24  ;;  %v1042_v25 = vsel %vm403_vm1, %v3158_v20, %v1041_v44  ;;  %v3183_v15 = vsel %vm403_vm1, %v922_v32, %v937_v14  ;;  %v1088_v44 = vsel %vm403_vm1, %v1087_v5, %v2949_v21  ;;  %v3203_v21 = vpop.trf.xlu1 }
 0x2fb   :  { %v1090_v55 = vsel %vm403_vm1, %v702_v6, %v3986_v40  ;;  %1684 = vrot.lane.b32.xlu0 %v1042_v25, %s2157_s19  ;;  %v512_v6 = vpop.trf.xlu2  ;;  %v1178_v25 = vsel %vm403_vm1, %v2703_v48, %v1177_v35  ;;  %v3194_v11 = vperm.slane %v1088_v44, %v2649_v53  ;;  %v3198_v14 = vperm.slane %v3054_v4, %v2654_v62 }
 0x2fc   :  { %v1098_v42 = vperm.slane %v1090_v55, %v2649_v53  ;;  %v3189_v55 = vperm.slane %v1100_v10, %v2654_v62  ;;  %v3201_v40 = vperm.slane %v1176_v9, %v2649_v53  ;;  %v3207_v10 = vsel %vm403_vm1, %v923_v63, %v3030_v46  ;;  %1652 = vrot.lane.b32.xlu2 %v930_v8, %s2158_s20 }
 0x2fd   :  { %v1112_v48 = vsel %vm403_vm1, %v1111_v23, %v2828_v38  ;;  %v1123_v35 = vrot.slane %v3194_v11, 4  ;;  %v1289_v5 = vrot.slane %v512_v6, 4  ;;  %v3218_v9 = vperm.slane %v912_v12, %v2654_v62 }
 0x2fe   :  { %3987 = vst [vmem:[#allocation16_spill] sm:$0xff] %v3189_v55  ;;  %v1135_v24 = vrot.slane %v1098_v42, 4  ;;  %v1011_v46 = vrot.slane %v3119_v57, 4  ;;  %v3222_v44 = vperm.slane %v1178_v25, %v2649_v53  ;;  %v1149_v23 = vrot.slane %v3189_v55, 4 }
 0x2ff   :  { %v703_v0 = vpop.trf.xlu0  ;;  %v1124_v8 = vsel %vm403_vm1, %v1123_v35, %v2857_v49  ;;  %v933_v63 = vrot.slane %v3198_v14, 4  ;;  %v3988_v12 = vrot.slane %v2828_v38, 4  ;;  %v3989_v25 = vrot.slane %v2709_v54, 4 }
 0x300   :  { %v1136_v4 = vsel %vm403_vm1, %v1135_v24, %v2864_v28  ;;  %v935_v24 = vrot.slane %v922_v32, 4  ;;  %v1199_v55 = vrot.slane %v703_v0, 4  ;;  %v3242_v18 = vperm.slane %v1112_v48, %v2654_v62 }
 0x301   :  { %v3226_v59 = vperm.slane %v1136_v4, %v2654_v62  ;;  %v1114_v57 = vsel %vm403_vm1, %v3110_v16, %v3988_v12  ;;  %v1288_v22 = vsel %vm403_vm1, %v3989_v25, %v512_v6  ;;  %v3239_v4 = vperm.slane %v1124_v8, %v2654_v62  ;;  %1628 = vrot.lane.b32.xlu1 %v3132_v34, %s2159_s21 }
 0x302   :  { %v1290_v35 = vsel %vm403_vm1, %v2709_v54, %v1289_v5  ;;  %v3252_v32 = vsel %vm403_vm1, %v3218_v9, %v933_v63  ;;  %v3256_v16 = vsel %vm403_vm1, %v935_v24, %v3068_v41  ;;  %v1200_v54 = vsel %vm403_vm1, %v1199_v55, %v3015_v47 }
 0x303   :  { %1696 = vrot.lane.b32.xlu0 %v1048_v50, %s2160_s22  ;;  %v1155_v38 = vrot.slane %v3226_v59, 4  ;;  %v513_v6 = vpop.trf.xlu2  ;;  %v1150_v34 = vsel %vm403_vm1, %v3239_v4, %v1149_v23  ;;  %v3263_v48 = vperm.slane %v1114_v57, %v2654_v62  ;;  %v3990_v50 = vrot.slane %v2864_v28, 4 }
 0x304   :  { %v3991_v63 = vrot.slane %v2844_v60, 4  ;;  %v3992_v55 = vrot.slane %v3015_v47, 4  ;;  %v3278_v12 = vperm.slane %v1288_v22, %v2649_v53  ;;  %v3281_v28 = vperm.slane %v1200_v54, %v2649_v53  ;;  %1644 = vrot.lane.b32.xlu2 %v3138_v51, %s2161_s23 }
 0x305   :  { %v1138_v5 = vsel %vm403_vm1, %v1098_v42, %v3990_v50  ;;  %v3285_v42 = vsel %vm403_vm1, %v1155_v38, %v3242_v18  ;;  %v3291_v25 = vperm.slane %v1290_v35, %v2649_v53  ;;  %v1161_v22 = vrot.slane %v3263_v48, 4  ;;  %v3306_v35 = vpop.trf.xlu1 }
 0x306   :  { %v1214_v41 = vsel %vm403_vm1, %v3201_v40, %v3991_v63  ;;  %v1202_v24 = vsel %vm403_vm1, %v703_v0, %v3992_v55  ;;  %v3288_v57 = vperm.slane %v1138_v5, %v2654_v62  ;;  %v3993_v47 = vrot.slane %v3040_v36, 4 }
 0x307   :  { %v1012_v38 = vsel %vm403_vm1, %v1011_v46, %v2835_v26  ;;  %v3304_v50 = vperm.slane %v1202_v24, %v2649_v53  ;;  %v1401_v63 = vrot.slane %v513_v6, 4  ;;  %v704_v36 = vpop.trf.xlu0  ;;  %v931_v26 = vrot.slane %v3218_v9, 4 }
 0x308   :  { %v988_v0 = vsel %vm403_vm1, %v3993_v47, %v2803_v56  ;;  %v3312_v51 = vperm.slane %v1012_v38, %v2654_v62  ;;  %v3316_v56 = vsel %vm403_vm1, %v3288_v57, %v1161_v22  ;;  %v3320_v46 = vperm.slane %v1214_v41, %v2654_v62 }
 0x309   :  { %v3309_v5 = vperm.slane %v988_v0, %v2654_v62  ;;  %v1323_v55 = vrot.slane %v3278_v12, 4  ;;  %v1311_v24 = vrot.slane %v704_v36, 4  ;;  %v3995_v0 = vrot.slane %v2889_v33, 4  ;;  %1648 = vrot.lane.b32.xlu1 %v3154_v1, %s2162_s24 }
 0x30a   :  { %3994 = vst [vmem:[#allocation17_spill] sm:$0xff] %v3320_v46  ;;  %v3335_v41 = vsel %vm403_vm1, %v931_v26, %v3198_v14  ;;  %v1265_v9 = vrot.slane %v3320_v46, 4  ;;  %v3997_v14 = vrot.slane %v2892_v58, 4  ;;  %v3999_v46 = vrot.slane %v3080_v19, 4 }
 0x30b   :  { %v1037_v47 = vrot.slane %v3309_v5, 4  ;;  %v1238_v38 = vsel %vm403_vm1, %v3281_v28, %v3995_v0  ;;  %1708 = vrot.lane.b32.xlu0 %v1150_v34, %s2163_s25  ;;  %v3996_v0 = vrot.slane %v2719_v61, 4  ;;  %v1312_v54 = vsel %vm403_vm1, %v1311_v24, %v3115_v43  ;;  %v514_v1 = vpop.trf.xlu2 }
 0x30c   :  { %v3338_v22 = vperm.slane %v1238_v38, %v2654_v62  ;;  %v1250_v26 = vsel %vm403_vm1, %v3304_v50, %v3997_v14  ;;  %v1402_v38 = vsel %vm403_vm1, %v2719_v61, %v1401_v63  ;;  %v3360_v24 = vperm.slane %v1312_v54, %v2649_v53  ;;  %1668 = vrot.lane.b32.xlu2 %v3183_v15, %s2164_s26 }
 0x30d   :  { %v1400_v8 = vsel %vm403_vm1, %v3996_v0, %v513_v6  ;;  %v3347_v34 = vsel %vm403_vm1, %v3312_v51, %v1037_v47  ;;  %v3998_v6 = vrot.slane %v3115_v43, 4  ;;  %v1513_v23 = vrot.slane %v514_v1, 4 }
 0x30e   :  { %v3364_v47 = vsel %vm403_vm1, %v3338_v22, %v1265_v9  ;;  %v1000_v14 = vsel %vm403_vm1, %v3999_v46, %v2809_v7  ;;  %v4000_v61 = vrot.slane %v3103_v39, 4  ;;  %v3376_v54 = vperm.slane %v1400_v8, %v2649_v53 }
 0x30f   :  { %v1314_v0 = vsel %vm403_vm1, %v704_v36, %v3998_v6  ;;  %v1039_v19 = vrot.slane %v3158_v20, 4  ;;  %v3383_v7 = vperm.slane %v1402_v38, %v2649_v53  ;;  %v4001_v46 = vrot.slane %v2854_v52, 4  ;;  %v705_v9 = vpop.trf.xlu0 }
 0x310   :  { %v1024_v43 = vsel %vm403_vm1, %v4000_v61, %v2840_v13  ;;  %v3386_v39 = vperm.slane %v1314_v0, %v2649_v53  ;;  %v1347_v13 = vrot.slane %v3360_v24, 4  ;;  %v1006_v15 = vperm.slane %v1000_v14, %v2654_v62 }
 0x311   :  { %v1030_v36 = vperm.slane %v1024_v43, %v2654_v62  ;;  %v1226_v8 = vsel %vm403_vm1, %v3222_v44, %v4001_v46  ;;  %v3396_v20 = vsel %vm403_vm1, %v1039_v19, %v3100_v27  ;;  %v3399_v38 = vperm.slane %v1250_v26, %v2654_v62  ;;  %1640 = vrot.lane.b32.xlu1 %v3207_v10, %s2165_s27 }
 0x312   :  { %v1235_v0 = vrot.slane %v3281_v28, 4  ;;  %v4002_v61 = vrot.slane %v2729_v3, 4  ;;  %v1514_v46 = vsel %vm403_vm1, %v2729_v3, %v1513_v23  ;;  %v1049_v63 = vrot.slane %v3161_v29, 4 }
 0x313   :  { %v1043_v6 = vrot.slane %v1030_v36, 4  ;;  %1720 = vrot.lane.b32.xlu0 %v3285_v42, %s2166_s28  ;;  %v3416_v26 = vperm.slane %v1226_v8, %v2654_v62  ;;  %v1035_v3 = vrot.slane %v3312_v51, 4  ;;  %v1359_v29 = vrot.slane %v3386_v39, 4 }
 0x314   :  { %v1512_v43 = vsel %vm403_vm1, %v4002_v61, %v514_v1  ;;  %v1271_v1 = vrot.slane %v3399_v38, 4  ;;  %v3423_v23 = vsel %vm403_vm1, %v3135_v30, %v1049_v63  ;;  %v1324_v10 = vsel %vm403_vm1, %v1323_v55, %v2868_v17  ;;  %1660 = vrot.lane.b32.xlu2 %v3252_v32, %s2167_s29 }
 0x315   :  { %v3413_v27 = vsel %vm403_vm1, %v1043_v6, %v1006_v15  ;;  %v1348_v42 = vsel %vm403_vm1, %v1347_v13, %v2927_v2  ;;  %v1447_v14 = vrot.slane %v3383_v7, 4  ;;  %v3431_v19 = vperm.slane %v1512_v43, %v2649_v53 }
 0x316   :  { %v3434_v8 = vperm.slane %v1514_v46, %v2649_v53  ;;  %v3438_v51 = vsel %vm403_vm1, %v1271_v1, %v3416_v26  ;;  %v4003_v30 = vrot.slane %v3203_v21, 4  ;;  %v3445_v55 = vsel %vm403_vm1, %v1035_v3, %v3309_v5 }
 0x317   :  { %v3448_v13 = vperm.slane %v1324_v10, %v2654_v62  ;;  %v3451_v6 = vperm.slane %v1348_v42, %v2654_v62  ;;  %v1423_v61 = vrot.slane %v705_v9, 4  ;;  %v4004_v43 = vrot.slane %v2822_v45, 4 }
 0x318   :  { %v1426_v63 = vsel %vm403_vm1, %v705_v9, %v4003_v30  ;;  %v4005_v1 = vrot.slane %v2857_v49, 4  ;;  %v1045_v3 = vrot.slane %v1006_v15, 4  ;;  %v4006_v9 = vrot.slane %v3291_v25, 4  ;;  %v4007_v30 = vld [vmem:[#allocation7_spill] sm:$0xff]  ;;  %v3474_v49 = vpop.trf.xlu0 }
 0x319   :  { %v1102_v46 = vsel %vm403_vm1, %v3086_v31, %v4004_v43  ;;  %v1373_v10 = vrot.slane %v3448_v13, 4  ;;  %v1360_v45 = vsel %vm403_vm1, %v1359_v29, %v4007_v30  ;;  %v3472_v31 = vperm.slane %v1426_v63, %v2649_v53  ;;  %1664 = vrot.lane.b32.xlu1 %v3256_v16, %s2168_s30 }
 0x31a   :  { %v1126_v5 = vsel %vm403_vm1, %v3194_v11, %v4005_v1  ;;  %v1336_v32 = vsel %vm403_vm1, %v4006_v9, %v2885_v37  ;;  %v3477_v11 = vsel %vm403_vm1, %v1030_v36, %v1045_v3  ;;  %v3480_v15 = vperm.slane %v1360_v45, %v2654_v62 }
 0x31b   :  { %v1134_v42 = vperm.slane %v1126_v5, %v2654_v62  ;;  %v1157_v43 = vrot.slane %v3242_v18, 4  ;;  %v1535_v1 = vrot.slane %v3474_v49, 4  ;;  %v3486_v5 = vsel %vm403_vm1, %v3451_v6, %v1373_v10  ;;  %1732 = vrot.lane.b32.xlu0 %v3316_v56, %s2169_s3 }
 0x31c   :  { %v1110_v29 = vperm.slane %v1102_v46, %v2654_v62  ;;  %v3494_v36 = vperm.slane %v1336_v32, %v2654_v62  ;;  %v1379_v18 = vrot.slane %v3480_v15, 4  ;;  %v1147_v46 = vrot.slane %v3239_v4, 4  ;;  %1676 = vrot.lane.b32.xlu2 %v3347_v34, %s2170_s4 }
 0x31d   :  { %v1151_v63 = vrot.slane %v1134_v42, 4  ;;  %v3499_v3 = vsel %vm403_vm1, %v3226_v59, %v1157_v43  ;;  %v1424_v10 = vsel %vm403_vm1, %v1423_v61, %v3203_v21  ;;  %v4008_v9 = vrot.slane %v2885_v37, 4  ;;  %v4010_v43 = vld [vmem:[#allocation8_spill] sm:$0xff] }
 0x31e   :  { %v4009_v32 = vrot.slane %v4007_v30, 4  ;;  %v1547_v59 = vrot.slane %v3431_v19, 4  ;;  %v4011_v4 = vrot.slane %v4010_v43, 4  ;;  %v1536_v61 = vsel %vm403_vm1, %v1535_v1, %v3306_v35 }
 0x31f   :  { %v3505_v16 = vsel %vm403_vm1, %v1151_v63, %v1110_v29  ;;  %v1338_v56 = vsel %vm403_vm1, %v3291_v25, %v4008_v9  ;;  %v3524_v37 = vsel %vm403_vm1, %v1379_v18, %v3494_v36  ;;  %v4012_v25 = vld [vmem:[#allocation16_spill] sm:$0xff]  ;;  %v3541_v1 = vperm.slane %v1424_v10, %v2649_v53 }
 0x320   :  { %v1362_v45 = vsel %vm403_vm1, %v3386_v39, %v4009_v32  ;;  %v1550_v21 = vsel %vm403_vm1, %v3431_v19, %v4011_v4  ;;  %v3528_v30 = vsel %vm403_vm1, %v1147_v46, %v4012_v25  ;;  %v3531_v39 = vperm.slane %v1338_v56, %v2654_v62 }
 0x321   :  { %v3534_v63 = vperm.slane %v1362_v45, %v2654_v62  ;;  %v4013_v19 = vrot.slane %v3201_v40, 4  ;;  %v1236_v46 = vsel %vm403_vm1, %v1235_v0, %v2889_v33  ;;  %v1153_v56 = vrot.slane %v1110_v29, 4  ;;  %v4015_v33 = vld [vmem:[#allocation5_spill] sm:$0xff]  ;;  %1656 = vrot.lane.b32.xlu1 %v3335_v41, %s2171_s0 }
 0x322   :  { %v1471_v40 = vrot.slane %v3472_v31, 4  ;;  %v3555_v10 = vperm.slane %v1236_v46, %v2654_v62  ;;  %v4014_v32 = vrot.slane %v3222_v44, 4  ;;  %v1542_v45 = vperm.slane %v1536_v61, %v2649_v53 }
 0x323   :  { %v1212_v9 = vsel %vm403_vm1, %v4013_v19, %v2844_v60  ;;  %v1385_v60 = vrot.slane %v3531_v39, 4  ;;  %v3564_v28 = vsel %vm403_vm1, %v1134_v42, %v1153_v56  ;;  %v4016_v0 = vrot.slane %v4015_v33, 4  ;;  %1744 = vrot.lane.b32.xlu0 %v3364_v47, %s2152_s14  ;;  %v4020_v47 = vld [vmem:[#allocation6_spill] sm:$0xff] }
 0x324   :  { %v3546_v18 = vperm.slane %v1212_v9, %v2654_v62  ;;  %v1224_v34 = vsel %vm403_vm1, %v4014_v32, %v2854_v52  ;;  %v4017_v52 = vrot.slane %v3304_v50, 4  ;;  %v1159_v19 = vrot.slane %v3288_v57, 4  ;;  %v4018_v9 = vld [vmem:[#allocation10_spill] sm:$0xff]  ;;  %v4021_v32 = vld [vmem:[#allocation11_spill] sm:$0xff]  ;;  %1688 = vrot.lane.b32.xlu2 %v3413_v27, %s2172_s5 }
 0x325   :  { %v1438_v29 = vsel %vm403_vm1, %v3376_v54, %v4016_v0  ;;  %v3572_v25 = vsel %vm403_vm1, %v3534_v63, %v1385_v60  ;;  %v1230_v44 = vperm.slane %v1224_v34, %v2654_v62  ;;  %v4019_v46 = vrot.slane %v4018_v9, 4 }
 0x326   :  { %v1261_v4 = vrot.slane %v3546_v18, 4  ;;  %v1248_v61 = vsel %vm403_vm1, %v4017_v52, %v2892_v58  ;;  %v1273_v57 = vrot.slane %v3416_v26, 4  ;;  %v3599_v41 = vsel %vm403_vm1, %v1159_v19, %v3263_v48 }
 0x327   :  { %v1462_v50 = vsel %vm403_vm1, %v3541_v1, %v4019_v46  ;;  %v1254_v58 = vperm.slane %v1248_v61, %v2654_v62  ;;  %v1448_v60 = vsel %vm403_vm1, %v1447_v14, %v4020_v47  ;;  %v1472_v34 = vsel %vm403_vm1, %v1471_v40, %v4021_v32 }
 0x328   :  { %v3586_v42 = vsel %vm403_vm1, %v3555_v10, %v1261_v4  ;;  %v3595_v56 = vperm.slane %v1462_v50, %v2654_v62  ;;  %v3608_v0 = vperm.slane %v1448_v60, %v2654_v62  ;;  %v3611_v26 = vperm.slane %v1472_v34, %v2654_v62 }
 0x329   :  { %v1267_v4 = vrot.slane %v1254_v58, 4  ;;  %v3615_v52 = vsel %vm403_vm1, %v3399_v38, %v1273_v57  ;;  %v3618_v48 = vperm.slane %v1438_v29, %v2654_v62  ;;  %v1263_v14 = vrot.slane %v3338_v22, 4  ;;  %1680 = vrot.lane.b32.xlu1 %v3396_v20, %s2173_s6 }
 0x32a   :  { %v1487_v61 = vrot.slane %v3595_v56, 4  ;;  %v4022_v40 = vrot.slane %v2868_v17, 4  ;;  %v1435_v46 = vrot.slane %v3376_v54, 4  ;;  %v1493_v29 = vrot.slane %v3608_v0, 4  ;;  %v4023_v17 = vld [vmem:[#allocation17_spill] sm:$0xff] }
 0x32b   :  { %v3630_v38 = vsel %vm403_vm1, %v1267_v4, %v1230_v44  ;;  %v4024_v54 = vrot.slane %v2927_v2, 4  ;;  %v1269_v57 = vrot.slane %v1230_v44, 4  ;;  %v1571_v60 = vrot.slane %v1542_v45, 4  ;;  %1756 = vrot.lane.b32.xlu0 %v3438_v51, %s2151_s1  ;;  %s2180_s1 = smov 120  }
 0x32c   :  { %v1326_v19 = vsel %vm403_vm1, %v3278_v12, %v4022_v40  ;;  %v3636_v22 = vsel %vm403_vm1, %v1487_v61, %v3618_v48  ;;  %v3640_v12 = vsel %vm403_vm1, %v1263_v14, %v4023_v17  ;;  %v3648_v34 = vsel %vm403_vm1, %v3611_v26, %v1493_v29  ;;  %1700 = vrot.lane.b32.xlu2 %v3423_v23, %s2174_s7  ;;  %v4030_v23 = vld [vmem:[#allocation9_spill] sm:$0xff] }
 0x32d   :  { %v1334_v50 = vperm.slane %v1326_v19, %v2654_v62  ;;  %v1350_v27 = vsel %vm403_vm1, %v3360_v24, %v4024_v54  ;;  %v3652_v61 = vperm.slane %v1550_v21, %v2654_v62  ;;  %v1559_v40 = vrot.slane %v3434_v8, 4  ;;  %v4026_v19 = vld [vmem:[#allocation12_spill] sm:$0xff] }
 0x32e   :  { %v1358_v4 = vperm.slane %v1350_v27, %v2654_v62  ;;  %v4025_v14 = vrot.slane %v4021_v32, 4  ;;  %v1548_v24 = vsel %vm403_vm1, %v1547_v59, %v4010_v43  ;;  %v3662_v44 = vsel %vm403_vm1, %v1254_v58, %v1269_v57 }
 0x32f   :  { %v4027_v29 = vrot.slane %v4026_v19, 4  ;;  %v1377_v17 = vrot.slane %v1334_v50, 4  ;;  %v1601_v43 = vrot.slane %v3652_v61, 4  ;;  %v1383_v58 = vrot.slane %v3534_v63, 4 }
 0x330   :  { %v1474_v2 = vsel %vm403_vm1, %v3472_v31, %v4025_v14  ;;  %v1375_v21 = vrot.slane %v1358_v4, 4  ;;  %v1381_v31 = vrot.slane %v3494_v36, 4  ;;  %v4028_v20 = vrot.slane %v4020_v47, 4 }
 0x331   :  { %v1574_v32 = vsel %vm403_vm1, %v1542_v45, %v4027_v29  ;;  %v1572_v54 = vsel %vm403_vm1, %v1571_v60, %v4026_v19  ;;  %v1436_v27 = vsel %vm403_vm1, %v1435_v46, %v4015_v33  ;;  %v1259_v63 = vrot.slane %v3555_v10, 4  ;;  %1672 = vrot.lane.b32.xlu1 %v3445_v55, %s2148_s13 }
 0x332   :  { %v3673_v59 = vperm.slane %v1574_v32, %v2654_v62  ;;  %v1450_v51 = vsel %vm403_vm1, %v3383_v7, %v4028_v20  ;;  %v3684_v45 = vsel %vm403_vm1, %v1375_v21, %v1334_v50  ;;  %v3688_v36 = vsel %vm403_vm1, %v3480_v15, %v1381_v31  ;;  %v4032_v32 = vld [vmem:[#allocation14_spill] sm:$0xff] }
 0x333   :  { %v1578_v47 = vperm.slane %v1572_v54, %v2654_v62  ;;  %v3699_v57 = vsel %vm403_vm1, %v1358_v4, %v1377_v17  ;;  %v4029_v50 = vrot.slane %v3306_v35, 4  ;;  %v1371_v10 = vrot.slane %v3451_v6, 4  ;;  %1768 = vrot.lane.b32.xlu0 %v3486_v5, %s2161_s23 }
 0x334   :  { %v3696_v7 = vsel %vm403_vm1, %v3673_v59, %v1601_v43  ;;  %v3710_v33 = vsel %vm403_vm1, %v1383_v58, %v3531_v39  ;;  %v1458_v46 = vperm.slane %v1450_v51, %v2654_v62  ;;  %v1459_v60 = vrot.slane %v3541_v1, 4  ;;  %1712 = vrot.lane.b32.xlu2 %v3505_v16, %s2175_s8 }
 0x335   :  { %v1538_v15 = vsel %vm403_vm1, %v3474_v49, %v4029_v50  ;;  %v1554_v4 = vperm.slane %v1548_v24, %v2654_v62  ;;  %v1595_v35 = vrot.slane %v1578_v47, 4  ;;  %v1442_v14 = vperm.slane %v1436_v27, %v2654_v62 }
 0x336   :  { %v3718_v49 = vsel %vm403_vm1, %v1371_v10, %v3448_v13  ;;  %v4031_v21 = vrot.slane %v4030_v23, 4  ;;  %v1482_v39 = vperm.slane %v1474_v2, %v2654_v62  ;;  %v1497_v19 = vrot.slane %v1458_v46, 4 }
 0x337   :  { %v1546_v29 = vperm.slane %v1538_v15, %v2649_v53  ;;  %v1596_v1 = vsel %vm403_vm1, %v1595_v35, %v1554_v4  ;;  %v3729_v24 = vsel %vm403_vm1, %v1259_v63, %v3546_v18  ;;  %v1585_v31 = vrot.slane %v4032_v32, 4 }
 0x338   :  { %v1562_v6 = vsel %vm403_vm1, %v3434_v8, %v4031_v21  ;;  %v1489_v8 = vrot.slane %v3618_v48, 4  ;;  %v1495_v13 = vrot.slane %v1482_v39, 4  ;;  %v3738_v2 = vsel %vm403_vm1, %v1482_v39, %v1497_v19 }
 0x339   :  { %v1570_v53 = vperm.slane %v1562_v6, %v2654_v62  ;;  %v1460_v18 = vsel %vm403_vm1, %v1459_v60, %v4018_v9  ;;  %v1485_v17 = vrot.slane %v1442_v14, 4  ;;  %v1560_v43 = vsel %vm403_vm1, %v1559_v40, %v4030_v23  ;;  %1692 = vrot.lane.b32.xlu1 %v3477_v11, %s2176_s9 }
 0x33a   :  { %v1466_v55 = vperm.slane %v1460_v18, %v2654_v62  ;;  %v3748_v5 = vsel %vm403_vm1, %v3595_v56, %v1489_v8  ;;  %v3751_v48 = vsel %vm403_vm1, %v1495_v13, %v1458_v46  ;;  %v1491_v58 = vrot.slane %v3611_v26, 4 }
 0x33b   :  { %v1583_v20 = vrot.slane %v1546_v29, 4  ;;  %v1586_v51 = vsel %vm403_vm1, %v1546_v29, %v1585_v31  ;;  %v1566_v54 = vperm.slane %v1560_v43, %v2654_v62  ;;  %v1609_v63 = vrot.slane %v1570_v53, 4  ;;  %1780 = vrot.lane.b32.xlu0 %v3524_v37, %s2171_s0 }
 0x33c   :  { %v1483_v9 = vrot.slane %v1466_v55, 4  ;;  %v3758_v40 = vsel %vm403_vm1, %v1466_v55, %v1485_v17  ;;  %v3762_v56 = vsel %vm403_vm1, %v1491_v58, %v3608_v0  ;;  %v1594_v27 = vperm.slane %v1586_v51, %v2654_v62  ;;  %1724 = vrot.lane.b32.xlu2 %v3499_v3, %s2177_s10 }
 0x33d   :  { %v1584_v50 = vsel %vm403_vm1, %v1583_v20, %v4032_v32  ;;  %v1605_v10 = vrot.slane %v1566_v54, 4  ;;  %v1597_v46 = vrot.slane %v1554_v4, 4 }
 0x33e   :  { %v1484_v26 = vsel %vm403_vm1, %v1483_v9, %v1442_v14  ;;  %v1607_v16 = vrot.slane %v1594_v27, 4  ;;  %v1590_v0 = vperm.slane %v1584_v50, %v2654_v62  ;;  %v3774_v15 = vsel %vm403_vm1, %v1594_v27, %v1609_v63 }
 0x33f   :  { %v1599_v14 = vrot.slane %v3673_v59, 4  ;;  %v3784_v11 = vsel %vm403_vm1, %v1578_v47, %v1597_v46 }
 0x340   :  { %v1608_v60 = vsel %vm403_vm1, %v1607_v16, %v1570_v53  ;;  %v1603_v35 = vrot.slane %v1590_v0, 4  ;;  %v3779_v23 = vsel %vm403_vm1, %v1590_v0, %v1605_v10 }
 0x341   :  { %v3791_v37 = vsel %vm403_vm1, %v1599_v14, %v3652_v61  ;;  %1704 = vrot.lane.b32.xlu1 %v3528_v30, %s2178_s11 }
 0x342   :  { %v3787_v62 = vsel %vm403_vm1, %v1603_v35, %v1566_v54 }
 0x343   :  { %1792 = vrot.lane.b32.xlu0 %v3572_v25, %s2164_s26  ;;  %v4033_v25 = vld [vmem:[#allocation15_spill] sm:$0xff] }
 0x344   :  { %1736 = vrot.lane.b32.xlu2 %v3586_v42, %s2154_s16  ;;  %v811_v42 = vrot.slane %v4033_v25, 4 }
 0x346   :  { %v1617_v3 = vpop.permute.xlu2 %1616 }
 0x349   :  { %1716 = vrot.lane.b32.xlu1 %v3564_v28, %s2179_s12 }
 0x34b   :  { %1804 = vrot.lane.b32.xlu0 %v3636_v22, %s2173_s6 }
 0x34c   :  { %1748 = vrot.lane.b32.xlu2 %v3630_v38, %s2156_s18 }
 0x34e   :  { %v1637_v61 = vpop.permute.xlu2 %1636 }
 0x351   :  { %1728 = vrot.lane.b32.xlu1 %v3599_v41, %s2180_s1 }
 0x353   :  { %1816 = vrot.lane.b32.xlu0 %v3648_v34, %s2176_s9 }
 0x354   :  { %1760 = vrot.lane.b32.xlu2 %v3615_v52, %s2155_s17  ;;  %v4034_v52 = vld [vmem:[#allocation13_spill] sm:$0xff] }
 0x355   :  { %v812_v22 = vsel %vm403_vm1, %v811_v42, %v4034_v52  ;;  %vm3949_vm1 = vcmask 490496  }
 0x356   :  { %v1653_v30 = vpop.permute.xlu2 %1652 }
 0x359   :  { %1740 = vrot.lane.b32.xlu1 %v3640_v12, %s2153_s15 }
 0x35b   :  { %1828 = vrot.lane.b32.xlu0 %v1596_v1, %s2178_s11  ;;  %v1633_v28 = vpop.permute.xlu1 %1632  ;;  %v1621_v34 = vpop.permute.xlu0 %1620 }
 0x35c   :  { %1772 = vrot.lane.b32.xlu2 %v3684_v45, %s2162_s24 }
 0x35e   :  { %v1645_v38 = vpop.permute.xlu2 %1644 }
 0x361   :  { %1752 = vrot.lane.b32.xlu1 %v3662_v44, %s2159_s21 }
 0x363   :  { %1840 = vrot.lane.b32.xlu0 %v3696_v7, %s2179_s12  ;;  %v1613_v41 = vpop.permute.xlu1 %1612 }
 0x364   :  { %v1860_v12 = vsel %vm1859_vm2, %v812_v22, %v1613_v41  ;;  %1784 = vrot.lane.b32.xlu2 %v3688_v36, %s2167_s29 }
 0x365   :  { %v1862_v59 = vsel %vm1861_vm3, %v1860_v12, %v1617_v3 }
 0x366   :  { %v1864_v45 = vsel %vm1863_vm4, %v1862_v59, %v1621_v34  ;;  %v1669_v44 = vpop.permute.xlu2 %1668 }
 0x369   :  { %1764 = vrot.lane.b32.xlu1 %v3718_v49, %s2165_s27 }
 0x36b   :  { %1852 = vrot.lane.b32.xlu0 %v1608_v60, %s2180_s1  ;;  %v1625_v47 = vpop.permute.xlu1 %1624 }
 0x36c   :  { %v1866_v7 = vsel %vm1865_vm5, %v1864_v45, %v1625_v47  ;;  %1796 = vrot.lane.b32.xlu2 %v1484_v26, %s2148_s13 }
 0x36d   :  { %v1685_v31 = vpop.permute.xlu0 %1684 }
 0x36e   :  { %v1661_v21 = vpop.permute.xlu2 %1660 }
 0x371   :  { %1776 = vrot.lane.b32.xlu1 %v3699_v57, %s2158_s20 }
 0x373   :  { %v1629_v4 = vpop.permute.xlu1 %1628 }
 0x374   :  { %v1868_v36 = vsel %vm1867_vm6, %v1866_v7, %v1629_v4  ;;  %1808 = vrot.lane.b32.xlu2 %v3748_v5, %s2157_s19 }
 0x375   :  { %v1870_v49 = vsel %vm1869_vm7, %v1868_v36, %v1633_v28  ;;  %v1697_v53 = vpop.permute.xlu0 %1696 }
 0x376   :  { %v1872_v6 = vsel %vm1871_vm8, %v1870_v49, %v1637_v61  ;;  %v1677_v57 = vpop.permute.xlu2 %1676 }
 0x379   :  { %1788 = vrot.lane.b32.xlu1 %v3710_v33, %s2168_s30 }
 0x37b   :  { %v1649_v39 = vpop.permute.xlu1 %1648 }
 0x37c   :  { %1820 = vrot.lane.b32.xlu2 %v3751_v48, %s2160_s22 }
 0x37d   :  { %v1709_v58 = vpop.permute.xlu0 %1708 }
 0x37e   :  { %v1689_v8 = vpop.permute.xlu2 %1688 }
 0x381   :  { %1800 = vrot.lane.b32.xlu1 %v3758_v40, %s2170_s4 }
 0x383   :  { %v1641_v19 = vpop.permute.xlu1 %1640 }
 0x384   :  { %v1874_v29 = vsel %vm1873_vm9, %v1872_v6, %v1641_v19  ;;  %1832 = vrot.lane.b32.xlu2 %v3784_v11, %s2163_s25 }
 0x385   :  { %v1876_v1 = vsel %vm3951_vm10, %v1874_v29, %v1645_v38  ;;  %vm3958_vm10 = vcmask 752640  }
 0x386   :  { %v1878_v33 = vsel %vm3950_vm11, %v1876_v1, %v1649_v39  ;;  %v1701_v18 = vpop.permute.xlu2 %1700  ;;  %vm3957_vm11 = vcmask 719872  }
 0x387   :  { %v1880_v32 = vsel %vm3946_vm12, %v1878_v33, %v1653_v30  ;;  %vm3954_vm12 = vcmask 588800  }
 0x389   :  { %1812 = vrot.lane.b32.xlu1 %v3762_v56, %s2172_s5  ;;  %v1721_v56 = vpop.permute.xlu0 %1720 }
 0x38b   :  { %v1665_v13 = vpop.permute.xlu1 %1664 }
 0x38c   :  { %1844 = vrot.lane.b32.xlu2 %v3787_v62, %s2166_s28 }
 0x38e   :  { %v1713_v20 = vpop.permute.xlu2 %1712 }
 0x391   :  { %1824 = vrot.lane.b32.xlu1 %v3738_v2, %s2174_s7  ;;  %v1733_v10 = vpop.permute.xlu0 %1732 }
 0x393   :  { %v1657_v17 = vpop.permute.xlu1 %1656 }
 0x394   :  { %v1882_v43 = vsel %vm3945_vm13, %v1880_v32, %v1657_v17  ;;  %1856 = vrot.lane.b32.xlu2 %v3774_v15, %s2169_s3  ;;  %vm3952_vm13 = vcmask 556032  }
 0x395   :  { %v1884_v55 = vsel %vm3947_vm14, %v1882_v43, %v1661_v21  ;;  %vm3956_vm14 = vcmask 621568  }
 0x396   :  { %v1886_v5 = vsel %vm3948_vm15, %v1884_v55, %v1665_v13  ;;  %vm3955_vm15 = vcmask 654336   ;;  %v1725_v27 = vpop.permute.xlu2 %1724 }
 0x397   :  { %v1888_v48 = vsel %vm3949_vm1, %v1886_v5, %v1669_v44  ;;  %vm3959_vm1 = vcmask 687104  }
 0x399   :  { %1836 = vrot.lane.b32.xlu1 %v3791_v37, %s2175_s8  ;;  %v1745_v11 = vpop.permute.xlu0 %1744 }
 0x39b   :  { %v1681_v2 = vpop.permute.xlu1 %1680 }
 0x39e   :  { %v1737_v46 = vpop.permute.xlu2 %1736 }
 0x39f   :  { %v1920_v59 = vsel %vm1859_vm2, %v3729_v24, %v1737_v46  ;;  %vm4035_vm2 = vcmask 293888  }
 0x3a1   :  { %1848 = vrot.lane.b32.xlu1 %v3779_v23, %s2177_s10  ;;  %v1757_v25 = vpop.permute.xlu0 %1756 }
 0x3a3   :  { %v1673_v51 = vpop.permute.xlu1 %1672 }
 0x3a4   :  { %v1889_v9 = vsel %vm3953_vm0, %v1888_v48, %v1673_v51  ;;  %vm1906_vm0 = vcmask 818176  }
 0x3a5   :  { %v1891_v40 = vsel %vm3952_vm13, %v1889_v9, %v1677_v57  ;;  %vm1904_vm13 = vcmask 785408  }
 0x3a6   :  { %v1893_v54 = vsel %vm3954_vm12, %v1891_v40, %v1681_v2  ;;  %vm1908_vm12 = vcmask 850944   ;;  %v1749_v62 = vpop.permute.xlu2 %1748 }
 0x3a7   :  { %v1895_v26 = vsel %vm3956_vm14, %v1893_v54, %v1685_v31  ;;  %vm1912_vm14 = vcmask 916480  }
 0x3a8   :  { %v1897_v63 = vsel %vm3955_vm15, %v1895_v26, %v1689_v8  ;;  %vm1910_vm15 = vcmask 883712  }
 0x3a9   :  { %v1769_v22 = vpop.permute.xlu0 %1768 }
 0x3ab   :  { %v1693_v50 = vpop.permute.xlu1 %1692 }
 0x3ac   :  { %v1899_v16 = vsel %vm3959_vm1, %v1897_v63, %v1693_v50  ;;  %vm3960_vm1 = vcmask 1014784  }
 0x3ad   :  { %v1901_v0 = vsel %vm3957_vm11, %v1899_v16, %v1697_v53  ;;  %vm1914_vm11 = vcmask 949248  }
 0x3ae   :  { %v1903_v15 = vsel %vm3958_vm10, %v1901_v0, %v1701_v18  ;;  %vm1916_vm10 = vcmask 982016   ;;  %v1761_v38 = vpop.permute.xlu2 %1760 }
 0x3b1   :  { %v1781_v44 = vpop.permute.xlu0 %1780 }
 0x3b3   :  { %v1705_v60 = vpop.permute.xlu1 %1704 }
 0x3b4   :  { %v1905_v35 = vsel %vm1904_vm13, %v1903_v15, %v1705_v60 }
 0x3b5   :  { %v1907_v14 = vsel %vm1906_vm0, %v1905_v35, %v1709_v58 }
 0x3b6   :  { %v1909_v23 = vsel %vm1908_vm12, %v1907_v14, %v1713_v20  ;;  %v1773_v12 = vpop.permute.xlu2 %1772 }
 0x3b9   :  { %v1793_v6 = vpop.permute.xlu0 %1792 }
 0x3bb   :  { %v1717_v37 = vpop.permute.xlu1 %1716 }
 0x3bc   :  { %v1911_v3 = vsel %vm1910_vm15, %v1909_v23, %v1717_v37 }
 0x3bd   :  { %v1913_v61 = vsel %vm1912_vm14, %v1911_v3, %v1721_v56 }
 0x3be   :  { %v1915_v30 = vsel %vm1914_vm11, %v1913_v61, %v1725_v27  ;;  %v1785_v7 = vpop.permute.xlu2 %1784 }
 0x3c1   :  { %v1805_v31 = vpop.permute.xlu0 %1804 }
 0x3c3   :  { %v1729_v28 = vpop.permute.xlu1 %1728 }
 0x3c4   :  { %v1917_v42 = vsel %vm1916_vm10, %v1915_v30, %v1729_v28 }
 0x3c5   :  { %v3877_v41 = vsel %vm3960_vm1, %v1917_v42, %v1733_v10  ;;  %vm4046_vm1 = vcmask 654336  }
 0x3c6   :  { %v1797_v57 = vpop.permute.xlu2 %1796 }
 0x3c9   :  { %v1817_v55 = vpop.permute.xlu0 %1816 }
 0x3cb   :  { %v1741_v52 = vpop.permute.xlu1 %1740 }
 0x3cc   :  { %v1921_v45 = vsel %vm1861_vm3, %v1920_v59, %v1741_v52  ;;  %vm4036_vm3 = vcmask 326656  }
 0x3cd   :  { %v1922_v47 = vsel %vm1863_vm4, %v1921_v45, %v1745_v11  ;;  %vm4037_vm4 = vcmask 359424  }
 0x3ce   :  { %v1923_v4 = vsel %vm1865_vm5, %v1922_v47, %v1749_v62  ;;  %v1809_v8 = vpop.permute.xlu2 %1808  ;;  %vm4038_vm5 = vcmask 392192  }
 0x3d1   :  { %v1829_v40 = vpop.permute.xlu0 %1828 }
 0x3d3   :  { %v1753_v34 = vpop.permute.xlu1 %1752 }
 0x3d4   :  { %v1924_v21 = vsel %vm1867_vm6, %v1923_v4, %v1753_v34  ;;  %vm4039_vm6 = vcmask 424960  }
 0x3d5   :  { %v1925_v49 = vsel %vm1869_vm7, %v1924_v21, %v1757_v25  ;;  %vm4040_vm7 = vcmask 457728  }
 0x3d6   :  { %v1926_v39 = vsel %vm1871_vm8, %v1925_v49, %v1761_v38  ;;  %vm4041_vm8 = vcmask 490496   ;;  %v1821_v5 = vpop.permute.xlu2 %1820 }
 0x3d9   :  { %v1841_v16 = vpop.permute.xlu0 %1840 }
 0x3db   :  { %v1765_v36 = vpop.permute.xlu1 %1764 }
 0x3dc   :  { %v1927_v19 = vsel %vm1873_vm9, %v1926_v39, %v1765_v36  ;;  %vm4042_vm9 = vcmask 523264  }
 0x3dd   :  { %v1928_v29 = vsel %vm4035_vm2, %v1927_v19, %v1769_v22  ;;  %vm4043_vm2 = vcmask 556032  }
 0x3de   :  { %v1929_v1 = vsel %vm4036_vm3, %v1928_v29, %v1773_v12  ;;  %vm4044_vm3 = vcmask 588800   ;;  %v1833_v56 = vpop.permute.xlu2 %1832 }
 0x3e1   :  { %v1853_v23 = vpop.permute.xlu0 %1852 }
 0x3e3   :  { %v1777_v24 = vpop.permute.xlu1 %1776 }
 0x3e4   :  { %v1930_v33 = vsel %vm4037_vm4, %v1929_v1, %v1777_v24  ;;  %vm4045_vm4 = vcmask 621568  }
 0x3e5   :  { %v1931_v13 = vsel %vm4038_vm5, %v1930_v33, %v1781_v44  ;;  %vm4047_vm5 = vcmask 687104  }
 0x3e6   :  { %v1932_v53 = vsel %vm4039_vm6, %v1931_v13, %v1785_v7  ;;  %vm4048_vm6 = vcmask 719872   ;;  %v1845_v0 = vpop.permute.xlu2 %1844 }
 0x3eb   :  { %v1789_v32 = vpop.permute.xlu1 %1788 }
 0x3ec   :  { %v1933_v18 = vsel %vm4040_vm7, %v1932_v53, %v1789_v32  ;;  %vm4049_vm7 = vcmask 752640  }
 0x3ed   :  { %v1934_v43 = vsel %vm4041_vm8, %v1933_v18, %v1793_v6  ;;  %vm1959_vm8 = vcmask 1045508  }
 0x3ee   :  { %v1935_v48 = vsel %vm4042_vm9, %v1934_v43, %v1797_v57  ;;  %v1857_v62 = vpop.permute.xlu2 %1856  ;;  %vm1962_vm9 = vcmask 1045504  }
 0x3f3   :  { %v1801_v17 = vpop.permute.xlu1 %1800 }
 0x3f4   :  { %v1936_v2 = vsel %vm4043_vm2, %v1935_v48, %v1801_v17  ;;  %vm4050_vm2 = vcmask 1014784  }
 0x3f5   :  { %v1937_v58 = vsel %vm4044_vm3, %v1936_v2, %v1805_v31 }
 0x3f6   :  { %v1938_v51 = vsel %vm4045_vm4, %v1937_v58, %v1809_v8 }
 0x3fb   :  { %v1813_v20 = vpop.permute.xlu1 %1812 }
 0x3fc   :  { %v1939_v9 = vsel %vm4046_vm1, %v1938_v51, %v1813_v20  ;;  %vm1954_vm1 = vcmask 1041408  }
 0x3fd   :  { %v1940_v54 = vsel %vm4047_vm5, %v1939_v9, %v1817_v55 }
 0x3fe   :  { %v1941_v26 = vsel %vm4048_vm6, %v1940_v54, %v1821_v5 }
 0x403   :  { %v1825_v27 = vpop.permute.xlu1 %1824 }
 0x404   :  { %v1942_v63 = vsel %vm4049_vm7, %v1941_v26, %v1825_v27 }
 0x405   :  { %v1943_v50 = vsel %vm1904_vm13, %v1942_v63, %v1829_v40  ;;  %vm1956_vm13 = vcmask 1043458  }
 0x406   :  { %v1944_v10 = vsel %vm1906_vm0, %v1943_v50, %v1833_v56 }
 0x40b   :  { %v1837_v15 = vpop.permute.xlu1 %1836 }
 0x40c   :  { %v1945_v46 = vsel %vm1908_vm12, %v1944_v10, %v1837_v15 }
 0x40d   :  { %v1946_v60 = vsel %vm1910_vm15, %v1945_v46, %v1841_v16 }
 0x40e   :  { %v1947_v14 = vsel %vm1912_vm14, %v1946_v60, %v1845_v0 }
 0x413   :  { %v1849_v35 = vpop.permute.xlu1 %1848 }
 0x414   :  { %v1948_v11 = vsel %vm1914_vm11, %v1947_v14, %v1849_v35 }
 0x415   :  { %v1949_v37 = vsel %vm1916_vm10, %v1948_v11, %v1853_v23 }
 0x416   :  { %v1950_v3 = vsel %vm4050_vm2, %v1949_v37, %v1857_v62 }
 0x417   :  { %v1953_v61 = vrot.slane %v1950_v3, 6 }
 0x419   :  { %v1955_v30 = vsel %vm1954_vm1, %v3877_v41, %v1953_v61  ;;  %v1957_v28 = vsel %vm1956_vm13, %v3877_v41, %v1953_v61  ;;  %v1960_v25 = vsel %vm1959_vm8, %v3877_v41, %v1953_v61  ;;  %v1963_v42 = vsel %vm1962_vm9, %v1953_v61, %v3877_v41 }
 0x41a   :  { %v1958_v38 = vrot.slane %v1957_v28, 2  ;;  %v1961_v52 = vrot.slane %v1960_v25, 4  ;;  %v1964_v22 = vrot.slane %v1963_v42, 6  ;;  %1969 = vst [vmem:[#allocation2] sm:$0xf] %v1955_v30 }
 0x41c   :  { %1970 = vst [vmem:[#allocation2 + $0x4] sm:$0xf] %v1958_v38 }
 0x41d   :  { %1971 = vst [vmem:[#allocation2 + $0x8] sm:$0xf] %v1961_v52 }
 0x41e   :  { %1972 = vst [vmem:[#allocation2 + $0xc] sm:$0xf] %v1964_v22 }
 0x41f   :  { %1976 = vsyncadd [#allocation3], 192  ;;  %s1979_s17 = sshll.u32 %s3923_s2, 4  ;;  %s2181_s18 = smov [#allocation2]   ;;  %s1980_s17 = int_to_ptr.hbm [resolvable:$true] %s1979_s17 }
 0x420   :  { %s1977_s19 = sshll.u32 %s2181_s18, 4  ;;  %s1978_s19 = int_to_ptr.vmem [resolvable:$true] %s1977_s19 }
 0x421   :  { %1985 = dma.vmem_to_hbm [thread:$0]  %s1978_s19, 64, %s1980_s17, [#allocation3], %s2148_s13, %s2148_s13, %s2154_s16  }
 0x422   :  { %2146 = dma.done.wait [#allocation3], 256  }
 0x423   :  { %2147 = vsyncadd [#allocation3], 4294967040 }
 0x424   :  { %1990 = vsyncpa [#allocation3], 1 }

</bundles_post_ra>
